<compile_context>
chip_gen: v7x
topology: tpu7x:2x2x1
jax: 0.10.0
libtpu: 0.0.40
codegen_flags: <defaults>
</compile_context>

<pallas_src>
import functools

import numpy as np
import jax
import jax.numpy as jnp
from jax import lax
from jax.experimental import pallas as pl
from jax.experimental.pallas import tpu as pltpu

BN_EPS = 1e-5
LANE = 128
_DEFAULT_SCOPED_VMEM = 32 * 1024 * 1024


def _round_up(x, m):
    return (x + m - 1) // m * m


# ---------------------------------------------------------------------------
# Shared conv body: in-VMEM im2col (tap expansion) + one MXU matmul per image.
# ---------------------------------------------------------------------------
def _conv_acc(xp, w_ref, *, kh, kw, ho, wo):
    # xp:    [Hp, Wp, Cin]  bf16 block (straight from HBM, half the DMA of f32)
    # w_ref: [kh*kw*Cin, Coutp] bf16 (tap slow, channel fast, Cout lane-padded)
    # returns acc [Ho*Wo, Coutp] f32.
    cin = xp.shape[-1]
    # Tap expansion kept in f32: odd-offset sublane slices / minor-dim concat on a
    # tiny (Cin << 128) lane dim are relayout-heavy for packed bf16; this buffer lives
    # only in VMEM and the kernel is HBM-bound, so it costs ~nothing in wall clock.
    # TODO(synk): go bf16-native end-to-end (or lane-dense [Hp, Wp*Cin] layout) once
    #             the haloed row tiling lands.
    xf = xp.astype(jnp.float32)
    taps = []
    for i in range(kh):
        for j in range(kw):
            taps.append(xf[i:i + ho, j:j + wo, :])            # [Ho, Wo, Cin]
    patches = jnp.concatenate(taps, axis=-1)                  # [Ho, Wo, kh*kw*Cin]
    patches = patches.reshape(ho * wo, kh * kw * cin)         # layout-preserving collapse
    # bf16 MXU operands, f32 accumulation.
    return jnp.dot(patches.astype(jnp.bfloat16), w_ref[...],
                   preferred_element_type=jnp.float32)        # [Ho*Wo, Coutp]


# ---------------------------------------------------------------------------
# Phase 1: per-image partial BN statistics (conv output stays in VMEM).
# ---------------------------------------------------------------------------
def conv_stats_kernel(xp_ref, w_ref, stats_ref, *, kh, kw, ho, wo):
    # stats_ref: [1, 2, Coutp] f32; row 0 = sum(y), row 1 = sum(y*y)
    acc = _conv_acc(xp_ref[0], w_ref, kh=kh, kw=kw, ho=ho, wo=wo)
    stats_ref[0, 0:1, :] = jnp.sum(acc, axis=0, keepdims=True)
    stats_ref[0, 1:2, :] = jnp.sum(acc * acc, axis=0, keepdims=True)


# ---------------------------------------------------------------------------
# Phase 2: recompute conv + folded BN FMA epilogue; store only Cout channels.
# ---------------------------------------------------------------------------
def conv_bn_apply_kernel(xp_ref, w_ref, scale_ref, shift_ref, out_ref,
                         *, kh, kw, ho, wo, cout):
    acc = _conv_acc(xp_ref[0], w_ref, kh=kh, kw=kw, ho=ho, wo=wo)   # [Ho*Wo, Coutp]
    y = acc * scale_ref[...] + shift_ref[...]                       # f32 FMA, broadcast [1,Coutp]
    coutp = y.shape[-1]
    y4 = y.reshape(1, ho, wo, coutp)
    out_ref[...] = y4[..., :cout].astype(out_ref.dtype)             # no padded channels to HBM


def conv_bn2d(x_nchw, weight_oihw, gamma, beta,
              kernel_size=(3, 3), stride=(1, 1), padding=(1, 1), eps=BN_EPS):
    """ConvBn2d forward (training-mode BN).  x: [N, Cin, H, W] -> [N, Cout, Ho, Wo]."""
    assert tuple(stride) == (1, 1)  # TODO(synk): general stride not implemented.
    kh, kw = kernel_size
    ph, pw = padding
    N, Cin, H, W = x_nchw.shape
    Cout = weight_oihw.shape[0]
    Ho = H + 2 * ph - kh + 1
    Wo = W + 2 * pw - kw + 1
    Hp, Wp = H + 2 * ph, W + 2 * pw
    K = kh * kw * Cin
    Coutp = _round_up(Cout, LANE)
    M = N * Ho * Wo

    # NCHW -> NHWC, spatial zero-pad and bf16 cast in ONE wrapper layout pass.
    # TODO(synk): accept/return NHWC at the call site to drop the layout transposes.
    x_nhwc = jnp.transpose(x_nchw, (0, 2, 3, 1))
    xp = jnp.pad(x_nhwc, ((0, 0), (ph, ph), (pw, pw), (0, 0))).astype(jnp.bfloat16)

    # [Cout, Cin, kh, kw] -> [K, Cout] (tap slow, channel fast), Cout lane-padded to 128.
    w_mat = jnp.transpose(weight_oihw, (2, 3, 1, 0)).reshape(K, Cout)
    w_mat = jnp.pad(w_mat, ((0, 0), (0, Coutp - Cout))).astype(jnp.bfloat16)

    # Per-step VMEM budget (double-buffered input/output + weights + im2col + acc).
    xp_blk = Hp * Wp * Cin * 2
    out_blk = Ho * Wo * Cout * 4
    acc_blk = Ho * Wo * Coutp * 4
    patch_blk = Ho * Wo * K * 4
    budget = int(1.25 * (2 * xp_blk + 2 * out_blk + K * Coutp * 2 + patch_blk + acc_blk))

    def _params():
        kw_ = dict(dimension_semantics=("parallel",))
        if budget > _DEFAULT_SCOPED_VMEM:
            kw_["vmem_limit_bytes"] = min(budget, 64 * 1024 * 1024)
        return pltpu.CompilerParams(**kw_)

    conv_flops = 2 * M * K * Coutp

    # ---- Phase 1: BN partial statistics only (no conv-output HBM traffic). ----
    stats = pl.pallas_call(
        functools.partial(conv_stats_kernel, kh=kh, kw=kw, ho=Ho, wo=Wo),
        grid=(N,),
        in_specs=[
            pl.BlockSpec((1, Hp, Wp, Cin), lambda n: (n, 0, 0, 0)),
            pl.BlockSpec((K, Coutp), lambda n: (0, 0)),      # fetched once, reused
        ],
        out_specs=pl.BlockSpec((1, 2, Coutp), lambda n: (n, 0, 0)),
        out_shape=jax.ShapeDtypeStruct((N, 2, Coutp), jnp.float32),
        compiler_params=_params(),
        cost_estimate=pl.CostEstimate(
            flops=conv_flops, transcendentals=0,
            bytes_accessed=int(xp.size) * 2 + int(w_mat.size) * 2 + N * 2 * Coutp * 4),
    )(xp, w_mat)

    # ---- Combine tiny [N,2,Coutp] partials; fold BN into per-channel scale/shift. ----
    # TODO(synk): for very large M switch to shifted/Welford partial sums
    #             (E[y^2]-E[y]^2 in f32 loses precision for huge feature maps).
    total = jnp.sum(stats, axis=0)                           # [2, Coutp]
    mean = total[0] / M
    var = jnp.maximum(total[1] / M - mean * mean, 0.0)       # biased var (BN training mode)
    gamma_p = jnp.pad(gamma.astype(jnp.float32), (0, Coutp - Cout))
    beta_p = jnp.pad(beta.astype(jnp.float32), (0, Coutp - Cout))
    scale = gamma_p * lax.rsqrt(var + eps)
    shift = beta_p - mean * scale

    # ---- Phase 2: recompute conv (bit-identical acc) + folded BN epilogue. ----
    out_nhwc = pl.pallas_call(
        functools.partial(conv_bn_apply_kernel, kh=kh, kw=kw, ho=Ho, wo=Wo, cout=Cout),
        grid=(N,),
        in_specs=[
            pl.BlockSpec((1, Hp, Wp, Cin), lambda n: (n, 0, 0, 0)),
            pl.BlockSpec((K, Coutp), lambda n: (0, 0)),
            pl.BlockSpec((1, Coutp), lambda n: (0, 0)),
            pl.BlockSpec((1, Coutp), lambda n: (0, 0)),
        ],
        out_specs=pl.BlockSpec((1, Ho, Wo, Cout), lambda n: (n, 0, 0, 0)),
        out_shape=jax.ShapeDtypeStruct((N, Ho, Wo, Cout), jnp.float32),
        compiler_params=_params(),
        cost_estimate=pl.CostEstimate(
            flops=conv_flops + 2 * M * Coutp, transcendentals=0,
            bytes_accessed=int(xp.size) * 2 + int(w_mat.size) * 2
            + 2 * Coutp * 4 + M * Cout * 4),
    )(xp, w_mat, scale.reshape(1, Coutp), shift.reshape(1, Coutp))

    # Single remaining layout pass (PyTorch NCHW convention); no channel slice needed.
    return jnp.transpose(out_nhwc, (0, 3, 1, 2))


def _reference(x_nchw, weight_oihw, gamma, beta):
    # pure-JAX reference: conv (NCHW, pad 1, stride 1) + training-mode BN (f32).
    y = lax.conv_general_dilated(
        x_nchw, weight_oihw, window_strides=(1, 1), padding=((1, 1), (1, 1)),
        dimension_numbers=("NCHW", "OIHW", "NCHW"))
    mean = jnp.mean(y, axis=(0, 2, 3), keepdims=True)
    var = jnp.mean((y - mean) ** 2, axis=(0, 2, 3), keepdims=True)
    g = gamma.reshape(1, -1, 1, 1)
    b = beta.reshape(1, -1, 1, 1)
    return g * (y - mean) * lax.rsqrt(var + BN_EPS) + b


if __name__ == "__main__":
    key = jax.random.PRNGKey(0)
    k_x, k_w = jax.random.split(key)

    N, Cin, H, W = 2, 4, 16, 16
    Cout = 8

    x = jax.random.normal(k_x, (N, Cin, H, W), dtype=jnp.float32)
    weight = jax.random.normal(k_w, (Cout, Cin, 3, 3), dtype=jnp.float32) * 0.1
    gamma = 0.5 + 0.05 * jnp.arange(Cout, dtype=jnp.float32)   # deterministic BN affine
    beta = 0.01 * jnp.arange(Cout, dtype=jnp.float32)

    out = jax.block_until_ready(conv_bn2d(x, weight, gamma, beta))
    assert out.shape == (N, Cout, H, W)

    # Tight check: reference fed the same bf16-rounded matmul operands (isolates kernel logic).
    x_q = x.astype(jnp.bfloat16).astype(jnp.float32)
    w_q = weight.astype(jnp.bfloat16).astype(jnp.float32)
    ref_q = jax.block_until_ready(_reference(x_q, w_q, gamma, beta))
    np.testing.assert_allclose(np.asarray(out), np.asarray(ref_q), rtol=2e-3, atol=2e-3)

    # Loose check vs. pure-f32 module semantics (slack only covers bf16 operand quantization).
    ref = jax.block_until_ready(_reference(x, weight, gamma, beta))
    np.testing.assert_allclose(np.asarray(out), np.asarray(ref), rtol=5e-2, atol=5e-2)

    print("KERNEL_OK")
</pallas_src>

<mosaic_0001>
module attributes {stable_mosaic.version = 11 : i64} {
  func.func @conv_stats_kernel(%arg0: i32, %arg1: memref<1x18x18x4xbf16, #tpu.memory_space<vmem>>, %arg2: memref<36x128xbf16, #tpu.memory_space<vmem>>, %arg3: memref<1x2x128xf32, #tpu.memory_space<vmem>>) attributes {dimension_semantics = [#tpu.dimension_semantics<parallel>], iteration_bounds = array<i64: 2>, scalar_prefetch = 0 : i64, scratch_operands = 0 : i64, tpu.core_type = #tpu.core_type<tc>, window_params = [{transform_indices = @transform_0, window_bounds = array<i64: 1, 18, 18, 4>}, {pipeline_mode = #tpu.pipeline_mode<synchronous>, transform_indices = @transform_1, window_bounds = array<i64: 36, 128>}, {transform_indices = @transform_2, window_bounds = array<i64: 1, 2, 128>}]} {
    %c0 = arith.constant 0 : index
    %c0_0 = arith.constant 0 : index
    %c0_1 = arith.constant 0 : index
    %c0_2 = arith.constant 0 : index
    %0 = vector.load %arg1[%c0, %c0_0, %c0_1, %c0_2] : memref<1x18x18x4xbf16, #tpu.memory_space<vmem>>, vector<1x18x18x4xbf16>
    %1 = vector.shape_cast %0 : vector<1x18x18x4xbf16> to vector<18x18x4xbf16>
    %2 = arith.extf %1 : vector<18x18x4xbf16> to vector<18x18x4xf32>
    %3 = vector.extract_strided_slice %2 {offsets = [0, 0, 0], sizes = [16, 16, 4], strides = [1, 1, 1]} : vector<18x18x4xf32> to vector<16x16x4xf32>
    %4 = vector.extract_strided_slice %2 {offsets = [0, 1, 0], sizes = [16, 16, 4], strides = [1, 1, 1]} : vector<18x18x4xf32> to vector<16x16x4xf32>
    %5 = vector.extract_strided_slice %2 {offsets = [0, 2, 0], sizes = [16, 16, 4], strides = [1, 1, 1]} : vector<18x18x4xf32> to vector<16x16x4xf32>
    %6 = vector.extract_strided_slice %2 {offsets = [1, 0, 0], sizes = [16, 16, 4], strides = [1, 1, 1]} : vector<18x18x4xf32> to vector<16x16x4xf32>
    %7 = vector.extract_strided_slice %2 {offsets = [1, 1, 0], sizes = [16, 16, 4], strides = [1, 1, 1]} : vector<18x18x4xf32> to vector<16x16x4xf32>
    %8 = vector.extract_strided_slice %2 {offsets = [1, 2, 0], sizes = [16, 16, 4], strides = [1, 1, 1]} : vector<18x18x4xf32> to vector<16x16x4xf32>
    %9 = vector.extract_strided_slice %2 {offsets = [2, 0, 0], sizes = [16, 16, 4], strides = [1, 1, 1]} : vector<18x18x4xf32> to vector<16x16x4xf32>
    %10 = vector.extract_strided_slice %2 {offsets = [2, 1, 0], sizes = [16, 16, 4], strides = [1, 1, 1]} : vector<18x18x4xf32> to vector<16x16x4xf32>
    %11 = vector.extract_strided_slice %2 {offsets = [2, 2, 0], sizes = [16, 16, 4], strides = [1, 1, 1]} : vector<18x18x4xf32> to vector<16x16x4xf32>
    %12 = tpu.concatenate %3, %4, %5, %6, %7, %8, %9, %10, %11 in 2 : vector<16x16x4xf32>, vector<16x16x4xf32>, vector<16x16x4xf32>, vector<16x16x4xf32>, vector<16x16x4xf32>, vector<16x16x4xf32>, vector<16x16x4xf32>, vector<16x16x4xf32>, vector<16x16x4xf32> -> vector<16x16x36xf32>
    %13 = vector.shape_cast %12 : vector<16x16x36xf32> to vector<256x36xf32>
    %14 = arith.truncf %13 : vector<256x36xf32> to vector<256x36xbf16>
    %c0_3 = arith.constant 0 : index
    %c0_4 = arith.constant 0 : index
    %15 = vector.load %arg2[%c0_3, %c0_4] : memref<36x128xbf16, #tpu.memory_space<vmem>>, vector<36x128xbf16>
    %cst = arith.constant dense<0.000000e+00> : vector<256x128xf32>
    %16 = tpu.matmul %14, %15, %cst {dimension_numbers = #tpu.dot_dimension_numbers<[1], [0], [0], [1], [0, 0, 1, 1], [], []>} : vector<256x36xbf16>, vector<36x128xbf16>, vector<256x128xf32> -> vector<256x128xf32>
    %cst_5 = arith.constant dense<0.000000e+00> : vector<128xf32>
    %17 = vector.multi_reduction <add>, %16, %cst_5 [0] : vector<256x128xf32> to vector<128xf32>
    %18 = vector.shape_cast %17 : vector<128xf32> to vector<1x128xf32>
    %c0_6 = arith.constant 0 : index
    %c0_7 = arith.constant 0 : index
    %c0_8 = arith.constant 0 : index
    %19 = vector.load %arg3[%c0_6, %c0_7, %c0_8] : memref<1x2x128xf32, #tpu.memory_space<vmem>>, vector<1x1x128xf32>
    %20 = vector.shape_cast %19 : vector<1x1x128xf32> to vector<1x128xf32>
    %21 = vector.shape_cast %18 : vector<1x128xf32> to vector<1x1x128xf32>
    tpu.vector_store %arg3[%c0_6, %c0_7, %c0_8], %21 {strides = array<i32>} : memref<1x2x128xf32, #tpu.memory_space<vmem>>, vector<1x1x128xf32>,
    %22 = arith.mulf %16, %16 : vector<256x128xf32>
    %cst_9 = arith.constant dense<0.000000e+00> : vector<128xf32>
    %23 = vector.multi_reduction <add>, %22, %cst_9 [0] : vector<256x128xf32> to vector<128xf32>
    %24 = vector.shape_cast %23 : vector<128xf32> to vector<1x128xf32>
    %c0_10 = arith.constant 0 : index
    %c1 = arith.constant 1 : index
    %c0_11 = arith.constant 0 : index
    %25 = vector.load %arg3[%c0_10, %c1, %c0_11] : memref<1x2x128xf32, #tpu.memory_space<vmem>>, vector<1x1x128xf32>
    %26 = vector.shape_cast %25 : vector<1x1x128xf32> to vector<1x128xf32>
    %27 = vector.shape_cast %24 : vector<1x128xf32> to vector<1x1x128xf32>
    tpu.vector_store %arg3[%c0_10, %c1, %c0_11], %27 {strides = array<i32>} : memref<1x2x128xf32, #tpu.memory_space<vmem>>, vector<1x1x128xf32>,
    return
  }
  func.func @transform_0(%arg0: i32) -> (i32, i32, i32, i32) {
    %c0_i32 = arith.constant 0 : i32
    %c0_i32_0 = arith.constant 0 : i32
    %c0_i32_1 = arith.constant 0 : i32
    %c0_i32_2 = arith.constant 0 : i32
    return %arg0, %c0_i32, %c0_i32_0, %c0_i32_1 : i32, i32, i32, i32
  }
  func.func @transform_1(%arg0: i32) -> (i32, i32) {
    %c0_i32 = arith.constant 0 : i32
    %c0_i32_0 = arith.constant 0 : i32
    %c0_i32_1 = arith.constant 0 : i32
    return %c0_i32, %c0_i32_0 : i32, i32
  }
  func.func @transform_2(%arg0: i32) -> (i32, i32, i32) {
    %c0_i32 = arith.constant 0 : i32
    %c0_i32_0 = arith.constant 0 : i32
    %c0_i32_1 = arith.constant 0 : i32
    return %arg0, %c0_i32, %c0_i32_0 : i32, i32, i32
  }
}

</mosaic_0001>

<bundles_post_ra>
// kernel: tpu_custom_call.1
= control target key start
LH: loop header
LB: loop body
LE: loop exit
PB: predicated region body
PF: predicated region fallthrough
CT: control target
= control target key end

     0   :  { %7 = vsyncpa [#allocation3], 0  ;;  %s4224_s0 = inlined_call_operand.vmem [shape: bf16[2,18,18,4], index: 0, kind: input, shape index: {}]   ;;  %s4225_s1 = inlined_call_operand.vmem [shape: bf16[36,128], index: 1, kind: input, shape index: {}]   ;;  %s4226_s2 = inlined_call_operand.hbm [shape: f32[2,2,128], index: 2, kind: output, shape index: {}]  }
   0x1   :  { %9 = vsyncpa [#allocation3 + $0x1], 0  ;;  %s2867_s9 = smov 0   ;;  %s2869_s10 = smov 0  }
   0x2   :  { %s2871_s11 = smov 0   ;;  %s2873_s12 = smov 0  }
   0x3 LB: > { %s2888_s13 = sadd.s32 4294967295, %s2841_s12   ;;  %s1950_s14 = sadd.s32 4294967294, %s2841_s12   ;;  %s2841_s12 = sphi %s2873_s12, %s4391_s12   ;;  %s2837_s11 = sphi %s2871_s11, %s4390_s11   ;;  %s2833_s10 = sphi %s2869_s10, %s4389_s10   ;;  %s2829_s9 = sphi %s2867_s9, %s4388_s9  }
   0x4   : > { %s2892_s15 = sadd.s32 1, %s2841_s12   ;;  %s69_s16 = sadd.s32 1, %s2837_s11 }
   0x5   : > { %s66_s17 = ssub.s32 %s2841_s12, %s2892_s15  ;;  %p79_p0 = scmp.ne.s32.totalorder %s2837_s11, %s2833_s10 }
   0x6   : > { %p67_p1 = scmp.eq.s32.totalorder %s66_s17, 0  ;;  %p80_p2 = scmp.eq.s32.totalorder %s2888_s13, 1 }
   0x7   : > { %p85_p3 = scmp.ne.s32.totalorder %s2833_s10, %s2829_s9  ;;  %p86_p4 = scmp.eq.s32.totalorder %s1950_s14, 1 }
   0x8   : > { %s2903_s18 = scalar_select %p67_p1, %s2837_s11, %s69_s16  }
   0x9   : > { %p2905_p5 = por %p80_p2, %p79_p0  ;;  %p2909_p6 = por %p86_p4, %p85_p3 }
   0xa   : > { %p1953_p7 = scmp.ge.s32.totalorder %s2841_s12, 1  ;;  %p115_p8 = scmp.lt.s32.totalorder %s2841_s12, 3 }
   0xc   : > { %p116_p9 = pnand %p1953_p7, %p115_p8 }
   0xe   : > { %119 = sbr.rel (%p116_p9) target bundleno = 663 (0x297), region = 28 }
  0x15   : > { %p137_p10 = scmp.lt.s32.totalorder %s2888_s13, 1  ;;  %vm299_vm0 = vcmask 1046528   ;;  %s2843_s26 = smov 4   ;;  %vm476_vm1 = vcmask 1045504   ;;  %vm1604_vm2 = vcmask 1041408   ;;  %vm1255_vm3 = vcmask 31744  }
  0x16   : > { %s2844_s27 = smov 8   ;;  %s2845_s28 = smov 12   ;;  %vm1288_vm4 = vcmask 64512   ;;  %vm1321_vm5 = vcmask 97280   ;;  %vm1354_vm6 = vcmask 130048   ;;  %vm1387_vm7 = vcmask 162816  }
  0x17   : > { %s138_s21 = scalar_select %p137_p10, %s2888_s13, 1  ;;  %vm1420_vm8 = vcmask 195584   ;;  %vm1453_vm9 = vcmask 228352   ;;  %vm1486_vm10 = vcmask 261120   ;;  %vm1555_vm11 = vcmask 293888  }
  0x18   : > { %s2846_s29 = smov 16   ;;  %s2847_s4 = smov 20  }
  0x19   : > { %s2088_s22 = smul.u32 216, %s138_s21  ;;  %s2848_s7 = smov 24  }
  0x1a   : > { %s2849_s16 = smov 28   ;;  %s2850_s17 = smov 32  }
  0x1b   : > { %s2920_s25 = scalar_lea.vmem %s4224_s0, %s2088_s22  ;;  %s134_s21 = sand.u32 1, %s2833_s10  }
  0x1c   : > { %v2015_v0 = vld [vmem:[%s2920_s25 + $0x18] sm:$0xff]   ;;  %v2924_v1 = vld [vmem:[%s2920_s25 + $0x20] sm:$0x1]  ;;  %v2935_v7 = vld [vmem:[%s2920_s25 + $0x8] sm:$0x1]  ;;  %s1954_s22 = sshll.u32 %s134_s21, 1 }
  0x1d   : > { %v1980_v2 = vld [vmem:[%s2920_s25] sm:$0xff]   ;;  %v2927_v3 = vunpack.c.l.bf16 %v2015_v0  ;;  %v2929_v4 = vunpack.c.h.bf16 %v2015_v0  ;;  %v4233_v5 = vunpack.c.l.bf16 %v2924_v1  ;;  %v2939_v9 = vld [vmem:[%s2920_s25 + $0x2c] sm:$0x1]  ;;  %v4236_v11 = vunpack.c.l.bf16 %v2935_v7  ;;  %v2960_v23 = vld [vmem:[%s2920_s25 + $0x14] sm:$0x1]  ;;  %s1976_s23 = sshll.u32 %s2888_s13, 5 }
  0x1e   : > { %v2932_v6 = vunpack.c.l.bf16 %v1980_v2  ;;  %v152_v8 = vld [vmem:[%s2920_s25 + $0x24] sm:$0xff]   ;;  %v2941_v10 = vunpack.c.h.bf16 %v1980_v2  ;;  %v146_v14 = vld [vmem:[%s2920_s25 + $0xc] sm:$0xff]   ;;  %v4235_v21 = vunpack.c.l.bf16 %v2939_v9  ;;  %v158_v28 = vld [vmem:[%s2920_s25 + $0x3c] sm:$0xff]   ;;  %v4237_v37 = vunpack.c.l.bf16 %v2960_v23  ;;  %s136_s24 = scalar_lea.vmem [#allocation2], %s1954_s22  ;;  %s2851_s13 = smov [#allocation2]  }
  0x1f   : > { %4294 = vst [vmem:[#allocation5_spill] sm:$0xff] %v2927_v3  ;;  %4295 = vst [vmem:[#allocation6_spill] sm:$0xff] %v2929_v4  ;;  %v2944_v12 = vunpack.c.l.bf16 %v152_v8  ;;  %v2946_v13 = vunpack.c.h.bf16 %v152_v8  ;;  %v310_v15 = vrot.slane %v2927_v3, 1  ;;  %v311_v16 = vrot.slane %v2929_v4, 1  ;;  %v2975_v33 = vld [vmem:[%s2920_s25 + $0x44] sm:$0x1] }
  0x20   : > { %v313_v17 = vrot.slane %v4233_v5, 1  ;;  %v300_v18 = vrot.slane %v2932_v6, 1  ;;  %v301_v19 = vrot.slane %v2941_v10, 1  ;;  %v303_v20 = vrot.slane %v4236_v11, 1  ;;  %v2016_v38 = vld [vmem:[%s2920_s25 + $0x30] sm:$0xff]   ;;  %v2017_v58 = vld [vmem:[%s2920_s25 + $0x48] sm:$0xff]  }
  0x21   : > { %4296 = vst [vmem:[#allocation7_spill] sm:$0xff] %v2944_v12  ;;  %4297 = vst [vmem:[#allocation8_spill] sm:$0xff] %v2946_v13  ;;  %v315_v22 = vrot.slane %v2944_v12, 1  ;;  %v312_v24 = vsel %vm299_vm0, %v310_v15, %v311_v16  ;;  %v316_v26 = vrot.slane %v2946_v13, 1  ;;  %v2965_v27 = vunpack.c.l.bf16 %v146_v14  ;;  %v2991_v43 = vld [vmem:[%s2920_s25 + $0x38] sm:$0x1] }
  0x22   : > { %v314_v25 = vsel %vm299_vm0, %v311_v16, %v313_v17  ;;  %v302_v30 = vsel %vm299_vm0, %v300_v18, %v301_v19  ;;  %v304_v31 = vsel %vm299_vm0, %v301_v19, %v303_v20  ;;  %v318_v32 = vrot.slane %v4235_v21, 1  ;;  %v164_v52 = vld [vmem:[%s2920_s25 + $0x54] sm:$0xff]   ;;  %v3013_v57 = vld [vmem:[%s2920_s25 + $0x5c] sm:$0x1]  ;;  %v170_v19 = vld [vmem:[%s2920_s25 + $0x6c] sm:$0xff]   ;;  %s2783_s3 = sshll.u32 %s2851_s13, 4  ;;  %s2784_s3 = int_to_ptr.vmem [resolvable:$false] %s2783_s3 }
  0x23   : > { %4298 = vst [vmem:[#allocation9_spill] sm:$0xff] %v2965_v27  ;;  %v2968_v29 = vpack.i.bf16 %v314_v25, %v312_v24  ;;  %v2136_v34 = vpack.i.bf16 %v304_v31, %v302_v30  ;;  %v317_v35 = vsel %vm299_vm0, %v315_v22, %v316_v26  ;;  %v2978_v36 = vunpack.c.h.bf16 %v146_v14  ;;  %v3031_v14 = vld [vmem:[%s2920_s25 + $0x50] sm:$0x1]  ;;  %v3142_v5 = vld [vmem:[%s2920_s25 + $0x98] sm:$0x1] }
  0x24   : > { %v319_v39 = vsel %vm299_vm0, %v316_v26, %v318_v32  ;;  %v305_v40 = vrot.slane %v2965_v27, 1  ;;  %v2986_v41 = vunpack.c.l.bf16 %v158_v28  ;;  %v2988_v42 = vunpack.c.h.bf16 %v158_v28  ;;  %v3048_v26 = vld [vmem:[%s2920_s25 + $0x74] sm:$0x1]  ;;  %v2018_v28 = vld [vmem:[%s2920_s25 + $0x60] sm:$0xff]  }
  0x25   : > { %4299 = vst [vmem:[#allocation10_spill] sm:$0xff] %v2968_v29  ;;  %4300 = vst [vmem:[#allocation11_spill] sm:$0xff] %v2978_v36  ;;  %2147 = vrot.lane.b32.xlu1 %v2968_v29, %s2843_s26  ;;  %2137 = vrot.lane.b32.xlu0 %v2136_v34, %s2843_s26  ;;  %v2994_v44 = vpack.i.bf16 %v319_v39, %v317_v35  ;;  %v306_v45 = vrot.slane %v2978_v36, 1  ;;  %v308_v46 = vrot.slane %v4237_v37, 1  ;;  %v4232_v47 = vunpack.c.l.bf16 %v2975_v33  ;;  %v188_v21 = vld [vmem:[%s2920_s25 + $0xb4] sm:$0xff]  }
  0x26   : > { %4301 = vst [vmem:[#allocation12_spill] sm:$0xff] %v2986_v41  ;;  %4302 = vst [vmem:[#allocation13_spill] sm:$0xff] %v2988_v42  ;;  %v325_v48 = vrot.slane %v2986_v41, 1  ;;  %v326_v49 = vrot.slane %v2988_v42, 1  ;;  %v3002_v50 = vunpack.c.l.bf16 %v2016_v38  ;;  %v3004_v51 = vunpack.c.h.bf16 %v2016_v38 }
  0x27   : > { %4303 = vst [vmem:[#allocation14_spill] sm:$0xff] %v2994_v44  ;;  %v307_v53 = vsel %vm299_vm0, %v305_v40, %v306_v45  ;;  %v309_v54 = vsel %vm299_vm0, %v306_v45, %v308_v46  ;;  %v328_v55 = vrot.slane %v4232_v47, 1  ;;  %v4231_v56 = vunpack.c.l.bf16 %v2991_v43  ;;  %v3066_v45 = vld [vmem:[%s2920_s25 + $0x68] sm:$0x1] }
  0x28   : > { %4304 = vst [vmem:[#allocation15_spill] sm:$0xff] %v3002_v50  ;;  %4305 = vst [vmem:[#allocation16_spill] sm:$0xff] %v3004_v51  ;;  %v3018_v59 = vpack.i.bf16 %v309_v54, %v307_v53  ;;  %v327_v60 = vsel %vm299_vm0, %v325_v48, %v326_v49  ;;  %v320_v61 = vrot.slane %v3002_v50, 1  ;;  %v321_v62 = vrot.slane %v3004_v51, 1  ;;  %v176_v53 = vld [vmem:[%s2920_s25 + $0x84] sm:$0xff]  }
  0x29   : > { %2152 = vrot.lane.b32.xlu1 %v2994_v44, %s2843_s26  ;;  %v329_v63 = vsel %vm299_vm0, %v326_v49, %v328_v55  ;;  %v323_v0 = vrot.slane %v4231_v56, 1  ;;  %v3026_v2 = vunpack.c.l.bf16 %v164_v52  ;;  %v3028_v8 = vunpack.c.h.bf16 %v164_v52 }
  0x2a   : > { %4306 = vst [vmem:[#allocation17_spill] sm:$0xff] %v3018_v59  ;;  %2142 = vrot.lane.b32.xlu0 %v3018_v59, %s2843_s26  ;;  %v3035_v15 = vpack.i.bf16 %v329_v63, %v327_v60  ;;  %v322_v16 = vsel %vm299_vm0, %v320_v61, %v321_v62  ;;  %v4230_v17 = vunpack.c.l.bf16 %v3013_v57  ;;  %v3039_v18 = vunpack.c.l.bf16 %v2017_v58 }
  0x2b   : > { %v324_v20 = vsel %vm299_vm0, %v321_v62, %v323_v0  ;;  %v335_v22 = vrot.slane %v3026_v2, 1  ;;  %v336_v24 = vrot.slane %v3028_v8, 1  ;;  %v3045_v25 = vunpack.c.h.bf16 %v2017_v58 }
  0x2c   : > { %4307 = vst [vmem:[#allocation18_spill] sm:$0xff] %v3035_v15  ;;  %v3053_v30 = vpack.i.bf16 %v324_v20, %v322_v16  ;;  %v338_v31 = vrot.slane %v4230_v17, 1  ;;  %v4229_v32 = vunpack.c.l.bf16 %v3031_v14  ;;  %v330_v34 = vrot.slane %v3039_v18, 1  ;;  %v3089_v16 = vld [vmem:[%s2920_s25 + $0x8c] sm:$0x1] }
  0x2d   : > { %2162 = vrot.lane.b32.xlu1 %v3035_v15, %s2843_s26  ;;  %v337_v35 = vsel %vm299_vm0, %v335_v22, %v336_v24  ;;  %v331_v38 = vrot.slane %v3045_v25, 1  ;;  %v3061_v39 = vunpack.c.l.bf16 %v170_v19  ;;  %v3063_v40 = vunpack.c.h.bf16 %v170_v19  ;;  %v2019_v19 = vld [vmem:[%s2920_s25 + $0x78] sm:$0xff]  }
  0x2e   : > { %4308 = vst [vmem:[#allocation19_spill] sm:$0xff] %v3053_v30  ;;  %2157 = vrot.lane.b32.xlu0 %v3053_v30, %s2843_s26  ;;  %v339_v46 = vsel %vm299_vm0, %v336_v24, %v338_v31  ;;  %v333_v48 = vrot.slane %v4229_v32, 1  ;;  %v4228_v49 = vunpack.c.l.bf16 %v3048_v26  ;;  %v3074_v52 = vunpack.c.l.bf16 %v2018_v28  ;;  %v3124_v32 = vld [vmem:[%s2920_s25 + $0xa4] sm:$0x1]  ;;  %v3183_v30 = vld [vmem:[%s2920_s25 + $0xb0] sm:$0x1] }
  0x2f   : > { %v3077_v54 = vpack.i.bf16 %v339_v46, %v337_v35  ;;  %v332_v55 = vsel %vm299_vm0, %v330_v34, %v331_v38  ;;  %v345_v58 = vrot.slane %v3061_v39, 1  ;;  %v346_v60 = vrot.slane %v3063_v40, 1  ;;  %v3107_v46 = vld [vmem:[%s2920_s25 + $0x80] sm:$0x1] }
  0x30   : > { %v334_v61 = vsel %vm299_vm0, %v331_v38, %v333_v48  ;;  %v348_v62 = vrot.slane %v4228_v49, 1  ;;  %v3085_v63 = vunpack.c.h.bf16 %v2018_v28  ;;  %v4227_v0 = vunpack.c.l.bf16 %v3066_v45 }
  0x31   : > { %4309 = vst [vmem:[#allocation20_spill] sm:$0xff] %v3077_v54  ;;  %2172 = vrot.lane.b32.xlu1 %v3077_v54, %s2843_s26  ;;  %v3094_v20 = vpack.i.bf16 %v334_v61, %v332_v55  ;;  %v347_v22 = vsel %vm299_vm0, %v345_v58, %v346_v60  ;;  %v340_v24 = vrot.slane %v3074_v52, 1  ;;  %v3098_v31 = vunpack.c.l.bf16 %v176_v53  ;;  %v182_v61 = vld [vmem:[%s2920_s25 + $0x9c] sm:$0xff]  }
  0x32   : > { %v349_v28 = vsel %vm299_vm0, %v346_v60, %v348_v62  ;;  %v341_v34 = vrot.slane %v3085_v63, 1  ;;  %v343_v35 = vrot.slane %v4227_v0, 1  ;;  %v3104_v38 = vunpack.c.h.bf16 %v176_v53  ;;  %v3165_v54 = vld [vmem:[%s2920_s25 + $0xbc] sm:$0x1] }
  0x33   : > { %4310 = vst [vmem:[#allocation21_spill] sm:$0xff] %v3094_v20  ;;  %2167 = vrot.lane.b32.xlu0 %v3094_v20, %s2843_s26  ;;  %v3111_v48 = vpack.i.bf16 %v349_v28, %v347_v22  ;;  %v4234_v55 = vunpack.c.l.bf16 %v3089_v16  ;;  %v355_v58 = vrot.slane %v3098_v31, 1  ;;  %v3115_v60 = vunpack.c.l.bf16 %v2019_v19  ;;  %v2020_v22 = vld [vmem:[%s2920_s25 + $0x90] sm:$0xff]  }
  0x34   : > { %v342_v62 = vsel %vm299_vm0, %v340_v24, %v341_v34  ;;  %v344_v53 = vsel %vm299_vm0, %v341_v34, %v343_v35  ;;  %v356_v0 = vrot.slane %v3104_v38, 1  ;;  %v3121_v49 = vunpack.c.h.bf16 %v2019_v19 }
  0x35   : > { %4311 = vst [vmem:[#allocation22_spill] sm:$0xff] %v3111_v48  ;;  %2182 = vrot.lane.b32.xlu1 %v3111_v48, %s2843_s26  ;;  %v3129_v28 = vpack.i.bf16 %v344_v53, %v342_v62  ;;  %v358_v17 = vrot.slane %v4234_v55, 1  ;;  %v4242_v24 = vunpack.c.l.bf16 %v3107_v46  ;;  %v350_v34 = vrot.slane %v3115_v60, 1 }
  0x36   : > { %v357_v35 = vsel %vm299_vm0, %v355_v58, %v356_v0  ;;  %v351_v19 = vrot.slane %v3121_v49, 1  ;;  %v3137_v56 = vunpack.c.l.bf16 %v182_v61  ;;  %v3139_v47 = vunpack.c.h.bf16 %v182_v61 }
  0x37   : > { %4312 = vst [vmem:[#allocation23_spill] sm:$0xff] %v3129_v28  ;;  %2177 = vrot.lane.b32.xlu0 %v3129_v28, %s2843_s26  ;;  %v359_v62 = vsel %vm299_vm0, %v356_v0, %v358_v17  ;;  %v353_v53 = vrot.slane %v4242_v24, 1  ;;  %v4247_v58 = vunpack.c.l.bf16 %v3124_v32  ;;  %v3150_v55 = vunpack.c.l.bf16 %v2020_v22 }
  0x38   : > { %v3153_v61 = vpack.i.bf16 %v359_v62, %v357_v35  ;;  %v352_v11 = vsel %vm299_vm0, %v350_v34, %v351_v19  ;;  %v365_v37 = vrot.slane %v3137_v56, 1  ;;  %v366_v48 = vrot.slane %v3139_v47, 1  ;;  %v2021_v35 = vld [vmem:[%s2920_s25 + $0xa8] sm:$0xff]  }
  0x39   : > { %v354_v28 = vsel %vm299_vm0, %v351_v19, %v353_v53  ;;  %v368_v17 = vrot.slane %v4247_v58, 1  ;;  %v3161_v0 = vunpack.c.h.bf16 %v2020_v22  ;;  %v4254_v24 = vunpack.c.l.bf16 %v3142_v5 }
  0x3a   : > { %4313 = vst [vmem:[#allocation24_spill] sm:$0xff] %v3153_v61  ;;  %2192 = vrot.lane.b32.xlu1 %v3153_v61, %s2843_s26  ;;  %v3170_v34 = vpack.i.bf16 %v354_v28, %v352_v11  ;;  %v367_v62 = vsel %vm299_vm0, %v365_v37, %v366_v48  ;;  %v360_v20 = vrot.slane %v3150_v55, 1  ;;  %v3174_v19 = vunpack.c.l.bf16 %v188_v21 }
  0x3b   : > { %v369_v53 = vsel %vm299_vm0, %v366_v48, %v368_v17  ;;  %v361_v22 = vrot.slane %v3161_v0, 1  ;;  %v363_v58 = vrot.slane %v4254_v24, 1  ;;  %v3180_v15 = vunpack.c.h.bf16 %v188_v21 }
  0x3c   : > { %4314 = vst [vmem:[#allocation25_spill] sm:$0xff] %v3170_v34  ;;  %2187 = vrot.lane.b32.xlu0 %v3170_v34, %s2843_s26  ;;  %v3187_v11 = vpack.i.bf16 %v369_v53, %v367_v62  ;;  %v4259_v37 = vunpack.c.l.bf16 %v3165_v54  ;;  %v375_v28 = vrot.slane %v3174_v19, 1  ;;  %v3191_v61 = vunpack.c.l.bf16 %v2021_v35 }
  0x3d   : > { %v362_v48 = vsel %vm299_vm0, %v360_v20, %v361_v22  ;;  %v364_v17 = vsel %vm299_vm0, %v361_v22, %v363_v58  ;;  %v376_v21 = vrot.slane %v3180_v15, 1  ;;  %v3196_v24 = vunpack.c.h.bf16 %v2021_v35 }
  0x3e   : > { %4315 = vst [vmem:[#allocation26_spill] sm:$0xff] %v3187_v11  ;;  %2202 = vrot.lane.b32.xlu1 %v3187_v11, %s2843_s26  ;;  %v3200_v34 = vpack.i.bf16 %v364_v17, %v362_v48  ;;  %v378_v62 = vrot.slane %v4259_v37, 1  ;;  %v4271_v53 = vunpack.c.l.bf16 %v3183_v30  ;;  %v370_v44 = vrot.slane %v3191_v61, 1 }
  0x3f   : > { %v377_v20 = vsel %vm299_vm0, %v375_v28, %v376_v21  ;;  %v371_v58 = vrot.slane %v3196_v24, 1  ;;  %v482_v22 = vrot.slane %v2965_v27, 2  ;;  %v483_v35 = vrot.slane %v2978_v36, 2 }
  0x40   : > { %4316 = vst [vmem:[#allocation27_spill] sm:$0xff] %v3200_v34  ;;  %2197 = vrot.lane.b32.xlu0 %v3200_v34, %s2843_s26  ;;  %v379_v48 = vsel %vm299_vm0, %v376_v21, %v378_v62  ;;  %v373_v17 = vrot.slane %v4271_v53, 1  ;;  %v4317_v37 = vunpack.c.l.bf16 %v2960_v23  ;;  %v477_v29 = vrot.slane %v2932_v6, 2 }
  0x41   : > { %v3218_v28 = vpack.i.bf16 %v379_v48, %v377_v20  ;;  %v372_v59 = vsel %vm299_vm0, %v370_v44, %v371_v58  ;;  %v484_v27 = vsel %vm476_vm1, %v482_v22, %v483_v35  ;;  %v478_v36 = vrot.slane %v2941_v10, 2 }
  0x42   : > { %v485_v11 = vrot.slane %v4317_v37, 2  ;;  %v374_v34 = vsel %vm299_vm0, %v371_v58, %v373_v17  ;;  %v4319_v62 = vunpack.c.l.bf16 %v2935_v7  ;;  %v492_v23 = vrot.slane %v2944_v12, 2 }
  0x43   : > { %4318 = vst [vmem:[#allocation28_spill] sm:$0xff] %v3218_v28  ;;  %2212 = vrot.lane.b32.xlu1 %v3218_v28, %s2843_s26  ;;  %v3230_v37 = vpack.i.bf16 %v374_v34, %v372_v59  ;;  %v479_v44 = vsel %vm476_vm1, %v477_v29, %v478_v36  ;;  %v493_v22 = vrot.slane %v2946_v13, 2  ;;  %v487_v7 = vrot.slane %v2927_v3, 2 }
  0x44   : > { %v486_v21 = vsel %vm476_vm1, %v483_v35, %v485_v11  ;;  %v480_v53 = vrot.slane %v4319_v62, 2  ;;  %v4320_v11 = vunpack.c.l.bf16 %v2939_v9  ;;  %v488_v48 = vrot.slane %v2929_v4, 2 }
  0x45   : > { %v3232_v20 = vpack.i.bf16 %v486_v21, %v484_v27  ;;  %2207 = vrot.lane.b32.xlu0 %v3230_v37, %s2843_s26  ;;  %v494_v27 = vsel %vm476_vm1, %v492_v23, %v493_v22  ;;  %v4321_v34 = vunpack.c.l.bf16 %v2924_v1  ;;  %v502_v17 = vrot.slane %v2986_v41, 2 }
  0x46   : > { %v481_v58 = vsel %vm476_vm1, %v478_v36, %v480_v53  ;;  %v495_v35 = vrot.slane %v4320_v11, 2  ;;  %v489_v9 = vsel %vm476_vm1, %v487_v7, %v488_v48  ;;  %v503_v53 = vrot.slane %v2988_v42, 2 }
  0x47   : > { %v2216_v59 = vpack.i.bf16 %v481_v58, %v479_v44  ;;  %v490_v29 = vrot.slane %v4321_v34, 2  ;;  %v4322_v21 = vunpack.c.l.bf16 %v2975_v33  ;;  %2222 = vrot.lane.b32.xlu1 %v3232_v20, %s2844_s27  ;;  %v497_v23 = vrot.slane %v3002_v50, 2 }
  0x48   : > { %v496_v36 = vsel %vm476_vm1, %v493_v22, %v495_v35  ;;  %v498_v58 = vrot.slane %v3004_v51, 2  ;;  %v504_v22 = vsel %vm476_vm1, %v502_v17, %v503_v53  ;;  %v4323_v35 = vunpack.c.l.bf16 %v2991_v43 }
  0x49   : > { %v505_v62 = vrot.slane %v4322_v21, 2  ;;  %v3254_v44 = vpack.i.bf16 %v496_v36, %v494_v27  ;;  %v491_v1 = vsel %vm476_vm1, %v488_v48, %v490_v29  ;;  %2217 = vrot.lane.b32.xlu0 %v2216_v59, %s2844_s27  ;;  %v512_v34 = vrot.slane %v3026_v2, 2 }
  0x4a   : > { %v500_v33 = vrot.slane %v4323_v35, 2  ;;  %v3264_v7 = vpack.i.bf16 %v491_v1, %v489_v9  ;;  %v499_v27 = vsel %vm476_vm1, %v497_v23, %v498_v58  ;;  %v513_v48 = vrot.slane %v3028_v8, 2 }
  0x4b   : > { %v506_v11 = vsel %vm476_vm1, %v503_v53, %v505_v62  ;;  %v4324_v36 = vunpack.c.l.bf16 %v3013_v57  ;;  %v507_v53 = vrot.slane %v3039_v18, 2  ;;  %v508_v43 = vrot.slane %v3045_v25, 2  ;;  %2232 = vrot.lane.b32.xlu1 %v3254_v44, %s2844_s27 }
  0x4c   : > { %v501_v29 = vsel %vm476_vm1, %v498_v58, %v500_v33  ;;  %v3276_v59 = vpack.i.bf16 %v506_v11, %v504_v22  ;;  %v514_v9 = vsel %vm476_vm1, %v512_v34, %v513_v48  ;;  %v4325_v21 = vunpack.c.l.bf16 %v3031_v14 }
  0x4d   : > { %v515_v17 = vrot.slane %v4324_v36, 2  ;;  %v522_v1 = vrot.slane %v3061_v39, 2  ;;  %v523_v57 = vrot.slane %v3063_v40, 2  ;;  %v4326_v58 = vunpack.c.l.bf16 %v3048_v26  ;;  %2227 = vrot.lane.b32.xlu0 %v3264_v7, %s2844_s27 }
  0x4e   : > { %v510_v62 = vrot.slane %v4325_v21, 2  ;;  %v3288_v33 = vpack.i.bf16 %v501_v29, %v499_v27  ;;  %v509_v22 = vsel %vm476_vm1, %v507_v53, %v508_v43  ;;  %v517_v11 = vrot.slane %v3074_v52, 2 }
  0x4f   : > { %v516_v23 = vsel %vm476_vm1, %v513_v48, %v515_v17  ;;  %v525_v35 = vrot.slane %v4326_v58, 2  ;;  %v518_v14 = vrot.slane %v3085_v63, 2  ;;  %v524_v36 = vsel %vm476_vm1, %v522_v1, %v523_v57  ;;  %2242 = vrot.lane.b32.xlu1 %v3276_v59, %s2844_s27 }
  0x50   : > { %v3293_v34 = vpack.i.bf16 %v516_v23, %v514_v9  ;;  %v511_v48 = vsel %vm476_vm1, %v508_v43, %v510_v62  ;;  %v4327_v26 = vunpack.c.l.bf16 %v3066_v45  ;;  %v532_v53 = vrot.slane %v3098_v31, 2 }
  0x51   : > { %v526_v27 = vsel %vm476_vm1, %v523_v57, %v525_v35  ;;  %v519_v29 = vsel %vm476_vm1, %v517_v11, %v518_v14  ;;  %v533_v21 = vrot.slane %v3104_v38, 2  ;;  %v4328_v43 = vunpack.c.l.bf16 %v3089_v16  ;;  %2237 = vrot.lane.b32.xlu0 %v3288_v33, %s2844_s27 }
  0x52   : > { %v520_v17 = vrot.slane %v4327_v26, 2  ;;  %v527_v1 = vrot.slane %v3115_v60, 2  ;;  %v528_v45 = vrot.slane %v3121_v49, 2  ;;  %v3312_v23 = vpack.i.bf16 %v511_v48, %v509_v22 }
  0x53   : > { %v535_v62 = vrot.slane %v4328_v43, 2  ;;  %v4329_v57 = vunpack.c.l.bf16 %v3107_v46  ;;  %2252 = vrot.lane.b32.xlu1 %v3293_v34, %s2844_s27  ;;  %v3318_v35 = vpack.i.bf16 %v526_v27, %v524_v36  ;;  %v534_v16 = vsel %vm476_vm1, %v532_v53, %v533_v21 }
  0x54   : > { %v521_v9 = vsel %vm476_vm1, %v518_v14, %v520_v17  ;;  %v542_v14 = vrot.slane %v3137_v56, 2  ;;  %v529_v17 = vsel %vm476_vm1, %v527_v1, %v528_v45  ;;  %v543_v22 = vrot.slane %v3139_v47, 2 }
  0x55   : > { %v530_v58 = vrot.slane %v4329_v57, 2  ;;  %v3320_v11 = vpack.i.bf16 %v521_v9, %v519_v29  ;;  %v536_v26 = vsel %vm476_vm1, %v533_v21, %v535_v62  ;;  %v4330_v46 = vunpack.c.l.bf16 %v3124_v32  ;;  %2247 = vrot.lane.b32.xlu0 %v3312_v23, %s2844_s27 }
  0x56   : > { %v537_v27 = vrot.slane %v3150_v55, 2  ;;  %v538_v29 = vrot.slane %v3161_v0, 2  ;;  %v4331_v53 = vunpack.c.l.bf16 %v3142_v5  ;;  %v3338_v21 = vpack.i.bf16 %v536_v26, %v534_v16 }
  0x57   : > { %v545_v48 = vrot.slane %v4330_v46, 2  ;;  %v531_v36 = vsel %vm476_vm1, %v528_v45, %v530_v58  ;;  %2262 = vrot.lane.b32.xlu1 %v3318_v35, %s2844_s27  ;;  %v552_v32 = vrot.slane %v3174_v19, 2  ;;  %v553_v43 = vrot.slane %v3180_v15, 2 }
  0x58   : > { %v540_v9 = vrot.slane %v4331_v53, 2  ;;  %v4332_v62 = vunpack.c.l.bf16 %v3165_v54  ;;  %v3344_v45 = vpack.i.bf16 %v531_v36, %v529_v17  ;;  %v544_v57 = vsel %vm476_vm1, %v542_v14, %v543_v22 }
  0x59   : > { %v546_v58 = vsel %vm476_vm1, %v543_v22, %v545_v48  ;;  %2257 = vrot.lane.b32.xlu0 %v3320_v11, %s2844_s27  ;;  %v539_v5 = vsel %vm476_vm1, %v537_v27, %v538_v29  ;;  %v547_v26 = vrot.slane %v3191_v61, 2  ;;  %v548_v46 = vrot.slane %v3196_v24, 2 }
  0x5a   : > { %v555_v1 = vrot.slane %v4332_v62, 2  ;;  %v541_v16 = vsel %vm476_vm1, %v538_v29, %v540_v9  ;;  %v4333_v54 = vunpack.c.l.bf16 %v3183_v30  ;;  %v3358_v14 = vpack.i.bf16 %v546_v58, %v544_v57 }
  0x5b   : > { %2272 = vrot.lane.b32.xlu1 %v3338_v21, %s2844_s27  ;;  %v554_v17 = vsel %vm476_vm1, %v552_v32, %v553_v43  ;;  %v3362_v48 = vpack.i.bf16 %v541_v16, %v539_v5  ;;  %v549_v36 = vsel %vm476_vm1, %v547_v26, %v548_v46  ;;  %v2301_v9 = vpack.i.bf16 %v2929_v4, %v2927_v3  ;;  %v4335_v32 = vld [vmem:[#allocation9_spill] sm:$0xff] }
  0x5c   : > { %v550_v53 = vrot.slane %v4333_v54, 2  ;;  %v556_v22 = vsel %vm476_vm1, %v553_v43, %v555_v1  ;;  %v4336_v43 = vld [vmem:[#allocation11_spill] sm:$0xff]  ;;  %v2311_v1 = vpack.i.bf16 %v3004_v51, %v3002_v50  ;;  %v2306_v57 = vpack.i.bf16 %v2946_v13, %v2944_v12  ;;  %v4337_v26 = vld [vmem:[#allocation17_spill] sm:$0xff] }
  0x5d   : > { %2267 = vrot.lane.b32.xlu0 %v3344_v45, %s2844_s27  ;;  %v3367_v27 = vpack.i.bf16 %v556_v22, %v554_v17  ;;  %v2296_v62 = vpack.i.bf16 %v4336_v43, %v4335_v32  ;;  %v2321_v58 = vpack.i.bf16 %v3045_v25, %v3039_v18  ;;  %v2316_v5 = vpack.i.bf16 %v2988_v42, %v2986_v41  ;;  %v2777_v54 = vld [vmem:[%s4225_s1 + $0x8] sm:$0xff]   ;;  %v2778_v17 = vld [vmem:[%s4225_s1 + $0x10] ss:$0 sps:$4 sm:$0x33]  }
  0x5e   : > { %v551_v30 = vsel %vm476_vm1, %v548_v46, %v550_v53  ;;  %v2326_v16 = vpack.i.bf16 %v3028_v8, %v3026_v2  ;;  %v2776_v46 = vld [vmem:[%s4225_s1] sm:$0xff]   ;;  %v4338_v53 = vld [vmem:[#allocation10_spill] sm:$0xff] }
  0x5f   : > { %4334 = vst [vmem:[#allocation29_spill] sm:$0xff] %v3367_v27  ;;  %2282 = vrot.lane.b32.xlu1 %v3358_v14, %s2844_s27  ;;  %v3374_v29 = vpack.i.bf16 %v551_v30, %v549_v36  ;;  %2042 = vmatprep.subr.bf16.mxu0 %v2776_v46  ;;  %v4339_v22 = vld [vmem:[#allocation14_spill] sm:$0xff]  ;;  %v4340_v36 = vld [vmem:[#allocation19_spill] sm:$0xff] }
  0x60   : > { %2043 = vmatpush3.bf16.msra.mxu0 %v2776_v46  ;;  %2080 = vmatprep.subr.bf16.mxu1 %v2776_v46  ;;  %v4349_v41 = vld [vmem:[#allocation22_spill] sm:$0xff] }
  0x61   : > { %2277 = vrot.lane.b32.xlu0 %v3362_v48, %s2844_s27  ;;  %2083 = vmatpush3.bf16.msra.mxu1 %v2776_v46 }
  0x62   : > { %2044 = vmatprep.subr.bf16.mxu0 %v2777_v54  ;;  %2081 = vmatprep.subr.bf16.mxu1 %v2777_v54 }
  0x63   : > { %2292 = vrot.lane.b32.xlu1 %v3367_v27, %s2844_s27 }
  0x64   : > { %2045 = vmatpush3.bf16.msra.mxu0 %v2777_v54 }
  0x65   : > { %2287 = vrot.lane.b32.xlu0 %v3374_v29, %s2844_s27  ;;  %2084 = vmatpush3.bf16.msra.mxu1 %v2777_v54 }
  0x66   : > { %2086 = vmatprep.subr.msk.bf16.mxu0 %vm1604_vm2, %v2778_v17  ;;  %2087 = vmatprep.subr.msk.bf16.mxu1 %vm1604_vm2, %v2778_v17 }
  0x67   : > { %2302 = vrot.lane.b32.xlu1 %v2301_v9, %s2845_s28 }
  0x69   : > { %2297 = vrot.lane.b32.xlu0 %v2296_v62, %s2845_s28 }
  0x6b   : > { %2312 = vrot.lane.b32.xlu1 %v2311_v1, %s2845_s28 }
  0x6d   : > { %2307 = vrot.lane.b32.xlu0 %v2306_v57, %s2845_s28 }
  0x6f   : > { %2322 = vrot.lane.b32.xlu1 %v2321_v58, %s2845_s28 }
  0x71   : > { %2317 = vrot.lane.b32.xlu0 %v2316_v5, %s2845_s28 }
  0x73   : > { %2332 = vrot.lane.b32.xlu1 %v4337_v26, %s2846_s29 }
  0x75   : > { %2327 = vrot.lane.b32.xlu0 %v2326_v16, %s2845_s28 }
  0x77   : > { %2342 = vrot.lane.b32.xlu1 %v3232_v20, %s2847_s4  ;;  %v1606_v20 = vsel %vm1604_vm2, %v2778_v17, 0 }
  0x78   : > { %2047 = vmatpush3.bf16.msra.mxu0 %v1606_v20  ;;  %2085 = vmatpush3.bf16.msra.mxu1 %v1606_v20 }
  0x79   : > { %2337 = vrot.lane.b32.xlu0 %v4338_v53, %s2846_s29 }
  0x7b   : > { %2352 = vrot.lane.b32.xlu1 %v2301_v9, %s2848_s7 }
  0x7d   : > { %2347 = vrot.lane.b32.xlu0 %v3264_v7, %s2847_s4 }
  0x7f   : > { %2362 = vrot.lane.b32.xlu1 %v4338_v53, %s2849_s16  ;;  %v4345_v53 = vld [vmem:[#allocation20_spill] sm:$0xff] }
  0x81   : > { %2357 = vrot.lane.b32.xlu0 %v2306_v57, %s2848_s7  ;;  %v4344_v57 = vld [vmem:[#allocation21_spill] sm:$0xff] }
  0x83   : > { %2372 = vrot.lane.b32.xlu1 %v3264_v7, %s2850_s17 }
  0x85   : > { %2367 = vrot.lane.b32.xlu0 %v4339_v22, %s2849_s16 }
  0x87   : > { %2382 = vrot.lane.b32.xlu1 %v4339_v22, %s2846_s29 }
  0x89   : > { %2377 = vrot.lane.b32.xlu0 %v3254_v44, %s2850_s17 }
  0x8b   : > { %2392 = vrot.lane.b32.xlu1 %v3254_v44, %s2847_s4  ;;  %v4341_v44 = vld [vmem:[#allocation18_spill] sm:$0xff] }
  0x8d   : > { %2387 = vrot.lane.b32.xlu0 %v4340_v36, %s2846_s29 }
  0x8f   : > { %2402 = vrot.lane.b32.xlu1 %v2311_v1, %s2848_s7 }
  0x91   : > { %2397 = vrot.lane.b32.xlu0 %v3288_v33, %s2847_s4 }
  0x93   : > { %2412 = vrot.lane.b32.xlu1 %v4340_v36, %s2849_s16 }
  0x95   : > { %2407 = vrot.lane.b32.xlu0 %v2316_v5, %s2848_s7 }
  0x97   : > { %v3440_v7 = vpop.permute.xlu1 %2147  ;;  %2422 = vrot.lane.b32.xlu1 %v3288_v33, %s2850_s17  ;;  %v3444_v30 = vpop.permute.xlu0 %2137 }
  0x99   : > { %2417 = vrot.lane.b32.xlu0 %v4341_v44, %s2849_s16 }
  0x9b   : > { %v3448_v9 = vpop.permute.xlu1 %2152  ;;  %2432 = vrot.lane.b32.xlu1 %v4341_v44, %s2846_s29  ;;  %v2511_v44 = vpack.i.bf16 %v3063_v40, %v3061_v39 }
  0x9c   : > { %v3452_v62 = vpop.permute.xlu0 %2142 }
  0x9d   : > { %2427 = vrot.lane.b32.xlu0 %v3276_v59, %s2850_s17 }
  0x9f   : > { %v3456_v1 = vpop.permute.xlu1 %2162  ;;  %2442 = vrot.lane.b32.xlu1 %v3276_v59, %s2847_s4 }
  0xa0   : > { %4342 = vst [vmem:[#allocation9_spill] sm:$0xff] %v3456_v1  ;;  %v3460_v33 = vpop.permute.xlu0 %2157 }
  0xa1   : > { %4343 = vst [vmem:[#allocation11_spill] sm:$0xff] %v3460_v33  ;;  %2437 = vrot.lane.b32.xlu0 %v4344_v57, %s2846_s29 }
  0xa3   : > { %2452 = vrot.lane.b32.xlu1 %v2321_v58, %s2848_s7  ;;  %v2173_v5 = vpop.permute.xlu1 %2172  ;;  %v2481_v58 = vpack.i.bf16 %v3085_v63, %v3074_v52 }
  0xa4   : > { %v2174_v33 = vunpack.i.l.bf16 %v2173_v5 }
  0xa5   : > { %2447 = vrot.lane.b32.xlu0 %v3312_v23, %s2847_s4  ;;  %v2168_v26 = vpop.permute.xlu0 %2167 }
  0xa6   : > { %v2170_v27 = vunpack.i.h.bf16 %v2168_v26  ;;  %v2169_v28 = vunpack.i.l.bf16 %v2168_v26  ;;  %v1270_v13 = vsel %vm1255_vm3, %v3026_v2, %v2174_v33 }
  0xa7   : > { %2462 = vrot.lane.b32.xlu1 %v4344_v57, %s2849_s16  ;;  %v3469_v46 = vpop.permute.xlu1 %2182 }
  0xa8   : > { %v2184_v26 = vunpack.i.l.bf16 %v3469_v46  ;;  %v1268_v2 = vsel %vm1255_vm3, %v3039_v18, %v2169_v28 }
  0xa9   : > { %2457 = vrot.lane.b32.xlu0 %v2326_v16, %s2848_s7  ;;  %v3472_v59 = vpop.permute.xlu0 %2177 }
  0xaa   : > { %v2180_v33 = vunpack.i.h.bf16 %v3472_v59  ;;  %v1274_v18 = vsel %vm1255_vm3, %v3061_v39, %v2184_v26 }
  0xab   : > { %2472 = vrot.lane.b32.xlu1 %v3312_v23, %s2850_s17  ;;  %v4346_v23 = vld [vmem:[#allocation23_spill] sm:$0xff] }
  0xac   : > { %v3478_v54 = vpop.permute.xlu1 %2192 }
  0xad   : > { %2467 = vrot.lane.b32.xlu0 %v4345_v53, %s2849_s16  ;;  %v2195_v28 = vunpack.i.h.bf16 %v3478_v54 }
  0xae   : > { %v3482_v17 = vpop.permute.xlu0 %2187 }
  0xaf   : > { %2482 = vrot.lane.b32.xlu1 %v2481_v58, %s2845_s28 }
  0xb0   : > { %v3485_v20 = vpop.permute.xlu1 %2202 }
  0xb1   : > { %2477 = vrot.lane.b32.xlu0 %v3293_v34, %s2850_s17 }
  0xb2   : > { %v3489_v16 = vpop.permute.xlu0 %2197 }
  0xb3   : > { %2492 = vrot.lane.b32.xlu1 %v4346_v23, %s2846_s29 }
  0xb5   : > { %2487 = vrot.lane.b32.xlu0 %v4345_v53, %s2846_s29  ;;  %v3495_v22 = vpop.permute.xlu1 %2212 }
  0xb7   : > { %v3497_v36 = vpop.permute.xlu0 %2207  ;;  %2502 = vrot.lane.b32.xlu1 %v3320_v11, %s2847_s4 }
  0xb9   : > { %2497 = vrot.lane.b32.xlu0 %v3293_v34, %s2847_s4  ;;  %v3505_v57 = vpop.permute.xlu1 %2222  ;;  %v2175_v34 = vunpack.i.h.bf16 %v2173_v5  ;;  %v3533_v5 = vpack.i.bf16 %v3104_v38, %v3098_v31 }
  0xbb   : > { %v3507_v50 = vpop.permute.xlu0 %2217  ;;  %2512 = vrot.lane.b32.xlu1 %v2511_v44, %s2848_s7 }
  0xbd   : > { %2507 = vrot.lane.b32.xlu0 %v2481_v58, %s2848_s7  ;;  %v3511_v53 = vpop.permute.xlu1 %2232  ;;  %v3527_v58 = vpack.i.bf16 %v3121_v49, %v3115_v60 }
  0xbe   : > { %4347 = vst [vmem:[#allocation17_spill] sm:$0xff] %v3511_v53 }
  0xbf   : > { %v3513_v51 = vpop.permute.xlu0 %2227  ;;  %2522 = vrot.lane.b32.xlu1 %v4349_v41, %s2849_s16 }
  0xc0   : > { %4348 = vst [vmem:[#allocation10_spill] sm:$0xff] %v3513_v51  ;;  %v2185_v51 = vunpack.i.h.bf16 %v3469_v46  ;;  %v2179_v46 = vunpack.i.l.bf16 %v3472_v59 }
  0xc1   : > { %2517 = vrot.lane.b32.xlu0 %v4346_v23, %s2849_s16  ;;  %v3519_v42 = vpop.permute.xlu1 %2242 }
  0xc2   : > { %4350 = vst [vmem:[#allocation14_spill] sm:$0xff] %v3519_v42  ;;  %v1272_v39 = vsel %vm1255_vm3, %v3074_v52, %v2179_v46 }
  0xc3   : > { %v3521_v1 = vpop.permute.xlu0 %2237  ;;  %2532 = vrot.lane.b32.xlu1 %v3318_v35, %s2850_s17 }
  0xc4   : > { %4351 = vst [vmem:[#allocation19_spill] sm:$0xff] %v3521_v1  ;;  %v1271_v1 = vsel %vm1255_vm3, %v3028_v8, %v2175_v34  ;;  %v1269_v8 = vsel %vm1255_vm3, %v3045_v25, %v2170_v27  ;;  %v1275_v25 = vsel %vm1255_vm3, %v3063_v40, %v2185_v51  ;;  %v2194_v27 = vunpack.i.l.bf16 %v3478_v54 }
  0xc5   : > { %2527 = vrot.lane.b32.xlu0 %v3320_v11, %s2850_s17  ;;  %v2253_v23 = vpop.permute.xlu1 %2252  ;;  %v1273_v51 = vsel %vm1255_vm3, %v3085_v63, %v2180_v33  ;;  %v2190_v40 = vunpack.i.h.bf16 %v3482_v17  ;;  %v2189_v54 = vunpack.i.l.bf16 %v3482_v17  ;;  %v1279_v63 = vsel %vm1255_vm3, %v3104_v38, %v2195_v28 }
  0xc6   : > { %v2255_v42 = vunpack.i.h.bf16 %v2253_v23  ;;  %v2254_v12 = vunpack.i.l.bf16 %v2253_v23  ;;  %v1278_v52 = vsel %vm1255_vm3, %v3098_v31, %v2194_v27  ;;  %v2205_v17 = vunpack.i.h.bf16 %v3485_v20 }
  0xc7   : > { %v2248_v53 = vpop.permute.xlu0 %2247  ;;  %2542 = vrot.lane.b32.xlu1 %v3527_v58, %s2845_s28  ;;  %v2204_v33 = vunpack.i.l.bf16 %v3485_v20  ;;  %v1277_v38 = vsel %vm1255_vm3, %v3121_v49, %v2190_v40  ;;  %v1276_v31 = vsel %vm1255_vm3, %v3115_v60, %v2189_v54  ;;  %v2200_v20 = vunpack.i.h.bf16 %v3489_v16 }
  0xc8   : > { %v3544_v11 = vsel %vm1288_vm4, %v1271_v1, %v2255_v42  ;;  %v3547_v23 = vsel %vm1288_vm4, %v1270_v13, %v2254_v12  ;;  %v2250_v3 = vunpack.i.h.bf16 %v2248_v53  ;;  %v2249_v4 = vunpack.i.l.bf16 %v2248_v53 }
  0xc9   : > { %2537 = vrot.lane.b32.xlu0 %v2511_v44, %s2845_s28  ;;  %v2263_v34 = vpop.permute.xlu1 %2262  ;;  %v4352_v44 = vld [vmem:[#allocation25_spill] sm:$0xff]  ;;  %v2199_v28 = vunpack.i.l.bf16 %v3489_v16  ;;  %v1283_v49 = vsel %vm1255_vm3, %v3139_v47, %v2205_v17  ;;  %v1282_v60 = vsel %vm1255_vm3, %v3137_v56, %v2204_v33  ;;  %v2215_v16 = vunpack.i.h.bf16 %v3495_v22 }
  0xca   : > { %v3557_v42 = vsel %vm1288_vm4, %v1268_v2, %v2249_v4  ;;  %v3560_v12 = vsel %vm1288_vm4, %v1269_v8, %v2250_v3  ;;  %v2265_v13 = vunpack.i.h.bf16 %v2263_v34  ;;  %v2264_v1 = vunpack.i.l.bf16 %v2263_v34 }
  0xcb   : > { %v2258_v59 = vpop.permute.xlu0 %2257  ;;  %2552 = vrot.lane.b32.xlu1 %v4352_v44, %s2846_s29  ;;  %v2214_v40 = vunpack.i.l.bf16 %v3495_v22  ;;  %v2210_v22 = vunpack.i.h.bf16 %v3497_v36  ;;  %v2209_v17 = vunpack.i.l.bf16 %v3497_v36  ;;  %v4356_v36 = vld [vmem:[#allocation24_spill] sm:$0xff] }
  0xcc   : > { %v3571_v4 = vsel %vm1288_vm4, %v1275_v25, %v2265_v13  ;;  %v3574_v3 = vsel %vm1288_vm4, %v1274_v18, %v2264_v1  ;;  %v2260_v53 = vunpack.i.h.bf16 %v2258_v59  ;;  %v2259_v8 = vunpack.i.l.bf16 %v2258_v59 }
  0xcd   : > { %2547 = vrot.lane.b32.xlu0 %v4349_v41, %s2846_s29  ;;  %v2273_v26 = vpop.permute.xlu1 %2272 }
  0xce   : > { %v3585_v2 = vsel %vm1288_vm4, %v1272_v39, %v2259_v8  ;;  %v3588_v34 = vsel %vm1288_vm4, %v1273_v51, %v2260_v53  ;;  %v2275_v13 = vunpack.i.h.bf16 %v2273_v26  ;;  %v2274_v1 = vunpack.i.l.bf16 %v2273_v26 }
  0xcf   : > { %v2268_v41 = vpop.permute.xlu0 %2267  ;;  %2562 = vrot.lane.b32.xlu1 %v3344_v45, %s2847_s4 }
  0xd0   : > { %v3599_v46 = vsel %vm1288_vm4, %v1279_v63, %v2275_v13  ;;  %v3602_v25 = vsel %vm1288_vm4, %v1278_v52, %v2274_v1  ;;  %v2270_v18 = vunpack.i.h.bf16 %v2268_v41  ;;  %v2269_v59 = vunpack.i.l.bf16 %v2268_v41 }
  0xd1   : > { %2557 = vrot.lane.b32.xlu0 %v3318_v35, %s2847_s4  ;;  %v2283_v27 = vpop.permute.xlu1 %2282  ;;  %v1281_v63 = vsel %vm1255_vm3, %v3161_v0, %v2200_v20  ;;  %v1280_v52 = vsel %vm1255_vm3, %v3150_v55, %v2199_v28  ;;  %v1286_v20 = vsel %vm1255_vm3, %v3174_v19, %v2214_v40 }
  0xd2   : > { %v3613_v53 = vsel %vm1288_vm4, %v1276_v31, %v2269_v59  ;;  %v3616_v8 = vsel %vm1288_vm4, %v1277_v38, %v2270_v18  ;;  %v2285_v51 = vunpack.i.h.bf16 %v2283_v27  ;;  %v2284_v39 = vunpack.i.l.bf16 %v2283_v27 }
  0xd3   : > { %v2278_v35 = vpop.permute.xlu0 %2277  ;;  %2572 = vrot.lane.b32.xlu1 %v3533_v5, %s2848_s7  ;;  %v1287_v31 = vsel %vm1255_vm3, %v3180_v15, %v2215_v16 }
  0xd4   : > { %v3627_v54 = vsel %vm1288_vm4, %v1283_v49, %v2285_v51  ;;  %v3630_v26 = vsel %vm1288_vm4, %v1282_v60, %v2284_v39  ;;  %v2280_v13 = vunpack.i.h.bf16 %v2278_v35  ;;  %v2279_v1 = vunpack.i.l.bf16 %v2278_v35 }
  0xd5   : > { %4353 = vst [vmem:[#allocation18_spill] sm:$0xff] %v3630_v26  ;;  %2567 = vrot.lane.b32.xlu0 %v3527_v58, %s2848_s7  ;;  %v2293_v33 = vpop.permute.xlu1 %2292  ;;  %v1285_v49 = vsel %vm1255_vm3, %v3196_v24, %v2210_v22  ;;  %v1284_v60 = vsel %vm1255_vm3, %v3191_v61, %v2209_v17  ;;  %v2022_v22 = vld [vmem:[%s2920_s25 + $0xc0] sm:$0xff]  }
  0xd6   : > { %v3641_v41 = vsel %vm1288_vm4, %v1280_v52, %v2279_v1  ;;  %v3644_v18 = vsel %vm1288_vm4, %v1281_v63, %v2280_v13  ;;  %v2295_v59 = vunpack.i.h.bf16 %v2293_v33  ;;  %v2294_v38 = vunpack.i.l.bf16 %v2293_v33  ;;  %v4361_v33 = vld [vmem:[#allocation27_spill] sm:$0xff] }
  0xd7   : > { %4354 = vst [vmem:[#allocation21_spill] sm:$0xff] %v3641_v41  ;;  %4355 = vst [vmem:[#allocation20_spill] sm:$0xff] %v3644_v18  ;;  %v2288_v28 = vpop.permute.xlu0 %2287  ;;  %2582 = vrot.lane.b32.xlu1 %v4356_v36, %s2849_s16  ;;  %v2601_v1 = vpack.i.bf16 %v3161_v0, %v3150_v55  ;;  %v3698_v0 = vunpack.c.l.bf16 %v2022_v22 }
  0xd8   : > { %v3653_v58 = vsel %vm1288_vm4, %v1287_v31, %v2295_v59  ;;  %v3656_v27 = vsel %vm1288_vm4, %v1286_v20, %v2294_v38  ;;  %v2290_v51 = vunpack.i.h.bf16 %v2288_v28  ;;  %v2289_v39 = vunpack.i.l.bf16 %v2288_v28  ;;  %v3703_v59 = vld [vmem:[%s2920_s25 + $0xc8] sm:$0x1] }
  0xd9   : > { %4357 = vst [vmem:[#allocation23_spill] sm:$0xff] %v3653_v58  ;;  %4358 = vst [vmem:[#allocation22_spill] sm:$0xff] %v3656_v27  ;;  %2577 = vrot.lane.b32.xlu0 %v4352_v44, %s2849_s16  ;;  %v3664_v16 = vpop.permute.xlu1 %2302  ;;  %v3709_v38 = vpack.i.bf16 %v3139_v47, %v3137_v56  ;;  %v3713_v28 = vpack.i.bf16 %v3196_v24, %v3191_v61  ;;  %v2139_v61 = vunpack.i.l.bf16 %v3444_v30 }
  0xda   : > { %v3667_v40 = vsel %vm1288_vm4, %v1284_v60, %v2289_v39  ;;  %v3670_v35 = vsel %vm1288_vm4, %v1285_v49, %v2290_v51  ;;  %v4290_v51 = vunpack.c.l.bf16 %v3703_v59  ;;  %v752_v39 = vrot.slane %v3698_v0, 1 }
  0xdb   : > { %4359 = vst [vmem:[#allocation25_spill] sm:$0xff] %v3667_v40  ;;  %4360 = vst [vmem:[#allocation24_spill] sm:$0xff] %v3670_v35  ;;  %v3672_v13 = vpop.permute.xlu0 %2297  ;;  %2592 = vrot.lane.b32.xlu1 %v3338_v21, %s2850_s17  ;;  %v2140_v49 = vunpack.i.h.bf16 %v3444_v30  ;;  %v2225_v30 = vunpack.i.h.bf16 %v3505_v57 }
  0xdc   : > { %v2299_v40 = vunpack.i.l.bf16 %v3672_v13 }
  0xdd   : > { %2587 = vrot.lane.b32.xlu0 %v3344_v45, %s2850_s17  ;;  %v3680_v44 = vpop.permute.xlu1 %2312  ;;  %v3700_v45 = vunpack.c.h.bf16 %v2022_v22 }
  0xdf   : > { %v3682_v63 = vpop.permute.xlu0 %2307  ;;  %2602 = vrot.lane.b32.xlu1 %v2601_v1, %s2845_s28  ;;  %v4291_v24 = vrot.slane %v3700_v45, 1  ;;  %v3742_v22 = vpack.i.bf16 %v3700_v45, %v3698_v0 }
  0xe1   : > { %2597 = vrot.lane.b32.xlu0 %v3533_v5, %s2845_s28  ;;  %v3687_v52 = vpop.permute.xlu1 %2322  ;;  %v3758_v35 = vsel %vm299_vm0, %v752_v39, %v4291_v24  ;;  %v2304_v39 = vunpack.i.l.bf16 %v3664_v16 }
  0xe3   : > { %v3690_v17 = vpop.permute.xlu0 %2317  ;;  %2612 = vrot.lane.b32.xlu1 %v4361_v33, %s2846_s29 }
  0xe5   : > { %2607 = vrot.lane.b32.xlu0 %v4356_v36, %s2846_s29  ;;  %v3696_v55 = vpop.permute.xlu1 %2332 }
  0xe6   : > { %v2335_v24 = vunpack.i.h.bf16 %v3696_v55 }
  0xe7   : > { %v2328_v5 = vpop.permute.xlu0 %2327  ;;  %2622 = vrot.lane.b32.xlu1 %v3362_v48, %s2847_s4 }
  0xe8   : > { %v2330_v31 = vunpack.i.h.bf16 %v2328_v5  ;;  %v2329_v20 = vunpack.i.l.bf16 %v2328_v5  ;;  %v2224_v5 = vunpack.i.l.bf16 %v3505_v57  ;;  %v1256_v57 = vsel %vm1255_vm3, %v2932_v6, %v2139_v61 }
  0xe9   : > { %2617 = vrot.lane.b32.xlu0 %v3338_v21, %s2847_s4  ;;  %v2343_v36 = vpop.permute.xlu1 %2342  ;;  %v2145_v21 = vunpack.i.h.bf16 %v3452_v62  ;;  %v2334_v6 = vunpack.i.l.bf16 %v3696_v55 }
  0xea   : > { %v3722_v47 = vsel %vm1321_vm5, %v3557_v42, %v2329_v20  ;;  %v3726_v56 = vsel %vm1321_vm5, %v3560_v12, %v2330_v31  ;;  %v3737_v42 = vpack.i.bf16 %v3180_v15, %v3174_v19  ;;  %v2144_v12 = vunpack.i.l.bf16 %v3452_v62 }
  0xeb   : > { %v3731_v60 = vpop.permute.xlu0 %2337  ;;  %2632 = vrot.lane.b32.xlu1 %v3709_v38, %s2848_s7  ;;  %v3749_v20 = vrot.slane %v4290_v51, 1  ;;  %v1257_v15 = vsel %vm1255_vm3, %v2941_v10, %v2140_v49  ;;  %v2220_v19 = vunpack.i.h.bf16 %v3507_v50  ;;  %v2219_v62 = vunpack.i.l.bf16 %v3507_v50  ;;  %v4362_v49 = vld [vmem:[#allocation26_spill] sm:$0xff] }
  0xec   : > { %v2300_v51 = vunpack.i.h.bf16 %v3672_v13  ;;  %v1258_v50 = vsel %vm1255_vm3, %v4335_v32, %v2144_v12  ;;  %v2344_v13 = vunpack.i.l.bf16 %v2343_v36 }
  0xed   : > { %2627 = vrot.lane.b32.xlu0 %v2601_v1, %s2848_s7  ;;  %v2353_v31 = vpop.permute.xlu1 %2352  ;;  %v1259_v1 = vsel %vm1255_vm3, %v4336_v43, %v2145_v21  ;;  %v1291_v43 = vsel %vm1288_vm4, %v1258_v50, %v2224_v5  ;;  %v2345_v21 = vunpack.i.h.bf16 %v2343_v36  ;;  %v1289_v58 = vsel %vm1288_vm4, %v1256_v57, %v2219_v62 }
  0xee   : > { %v1292_v61 = vsel %vm1288_vm4, %v1259_v1, %v2225_v30  ;;  %v1290_v32 = vsel %vm1288_vm4, %v1257_v15, %v2220_v19  ;;  %v2355_v12 = vunpack.i.h.bf16 %v2353_v31  ;;  %v2354_v18 = vunpack.i.l.bf16 %v2353_v31 }
  0xef   : > { %v2348_v10 = vpop.permute.xlu0 %2347  ;;  %2642 = vrot.lane.b32.xlu1 %v4362_v49, %s2849_s16  ;;  %v1322_v41 = vsel %vm1321_vm5, %v1289_v58, %v2299_v40  ;;  %v1323_v55 = vsel %vm1321_vm5, %v1290_v32, %v2300_v51  ;;  %v2305_v36 = vunpack.i.h.bf16 %v3664_v16  ;;  %v2340_v40 = vunpack.i.h.bf16 %v3731_v60 }
  0xf0   : > { %v1355_v30 = vsel %vm1354_vm6, %v1322_v41, %v2334_v6  ;;  %v1356_v15 = vsel %vm1354_vm6, %v1323_v55, %v2335_v24  ;;  %v2350_v57 = vunpack.i.h.bf16 %v2348_v10  ;;  %v2349_v24 = vunpack.i.l.bf16 %v2348_v10 }
  0xf1   : > { %2637 = vrot.lane.b32.xlu0 %v4361_v33, %s2849_s16  ;;  %v2363_v27 = vpop.permute.xlu1 %2362  ;;  %v1324_v33 = vsel %vm1321_vm5, %v1291_v43, %v2304_v39  ;;  %v1388_v31 = vsel %vm1387_vm7, %v1355_v30, %v2344_v13  ;;  %v1389_v58 = vsel %vm1387_vm7, %v1356_v15, %v2345_v21  ;;  %v1325_v21 = vsel %vm1321_vm5, %v1292_v61, %v2305_v36 }
  0xf2   : > { %v2365_v26 = vunpack.i.h.bf16 %v2363_v27  ;;  %v2364_v5 = vunpack.i.l.bf16 %v2363_v27  ;;  %v2339_v27 = vunpack.i.l.bf16 %v3731_v60  ;;  %v1421_v16 = vsel %vm1420_vm8, %v1388_v31, %v2354_v18 }
  0xf3   : > { %v2358_v50 = vpop.permute.xlu0 %2357  ;;  %2652 = vrot.lane.b32.xlu1 %v3358_v14, %s2850_s17  ;;  %v1422_v19 = vsel %vm1420_vm8, %v1389_v58, %v2355_v12  ;;  %v853_v61 = vrot.slane %v3698_v0, 2  ;;  %v4364_v15 = vunpack.c.l.bf16 %v3703_v59  ;;  %v194_v58 = vld [vmem:[%s2920_s25 + $0xcc] sm:$0xff]  }
  0xf4   : > { %v1454_v39 = vsel %vm1453_vm9, %v1421_v16, %v2364_v5  ;;  %v1455_v60 = vsel %vm1453_vm9, %v1422_v19, %v2365_v26  ;;  %v2360_v6 = vunpack.i.h.bf16 %v2358_v50  ;;  %v2359_v43 = vunpack.i.l.bf16 %v2358_v50 }
  0xf5   : > { %2647 = vrot.lane.b32.xlu0 %v3362_v48, %s2850_s17  ;;  %v2373_v51 = vpop.permute.xlu1 %2372  ;;  %v1357_v55 = vsel %vm1354_vm6, %v1324_v33, %v2339_v27  ;;  %v1358_v26 = vsel %vm1354_vm6, %v1325_v21, %v2340_v40  ;;  %v4363_v5 = vrot.slane %v3700_v45, 1  ;;  %v854_v33 = vrot.slane %v3700_v45, 2  ;;  %v4365_v21 = vld [vmem:[#allocation6_spill] sm:$0xff] }
  0xf6   : > { %v2375_v62 = vunpack.i.h.bf16 %v2373_v51  ;;  %v2374_v41 = vunpack.i.l.bf16 %v2373_v51  ;;  %v1390_v36 = vsel %vm1387_vm7, %v1357_v55, %v2349_v24  ;;  %v1391_v30 = vsel %vm1387_vm7, %v1358_v26, %v2350_v57  ;;  %v3825_v51 = vld [vmem:[%s2920_s25 + $0xd4] sm:$0x1]  ;;  %v4367_v55 = vld [vmem:[#allocation17_spill] sm:$0xff]  ;;  %s1891_s25 = sshll.u32 %s136_s24, 4  ;;  %s4184_s25 = int_to_ptr.vmem [resolvable:$true] %s1891_s25 }
  0xf7   : > { %v2368_v1 = vpop.permute.xlu0 %2367  ;;  %2662 = vrot.lane.b32.xlu1 %v3713_v28, %s2845_s28  ;;  %v756_v50 = vsel %vm299_vm0, %v4363_v5, %v3749_v20  ;;  %v856_v31 = vrot.slane %v4364_v15, 2  ;;  %v1423_v20 = vsel %vm1420_vm8, %v1390_v36, %v2359_v43  ;;  %v1424_v0 = vsel %vm1420_vm8, %v1391_v30, %v2360_v6  ;;  %v4368_v5 = vld [vmem:[#allocation10_spill] sm:$0xff]  ;;  %s2779_s30 = scalar_lea.vmem %s4184_s25, 32  ;;  %p2786_p0 = scmp.lt.s32.totalorder %s4184_s25, %s2784_s3 }
  0xf8   : > { %v1487_v48 = vsel %vm1486_vm10, %v1454_v39, %v2374_v41  ;;  %v1488_v18 = vsel %vm1486_vm10, %v1455_v60, %v2375_v62  ;;  %v2370_v13 = vunpack.i.h.bf16 %v2368_v1  ;;  %v2369_v32 = vunpack.i.l.bf16 %v2368_v1  ;;  %p2780_p11 = scmp.ne.s32.totalorder %s4184_s25, %s2779_s30 }
  0xf9   : > { %2657 = vrot.lane.b32.xlu0 %v3709_v38, %s2845_s28  ;;  %v3804_v10 = vpop.permute.xlu1 %2382  ;;  %v1519_v12 = vpack.c.bf16 %v1488_v18, %v1487_v48  ;;  %v2150_v16 = vunpack.i.h.bf16 %v3440_v7  ;;  %v2149_v19 = vunpack.i.l.bf16 %v3440_v7  ;;  %v3835_v24 = vunpack.c.l.bf16 %v194_v58 }
  0xfa   : > { %v1456_v62 = vsel %vm1453_vm9, %v1423_v20, %v2369_v32  ;;  %v1457_v45 = vsel %vm1453_vm9, %v1424_v0, %v2370_v13  ;;  %v3837_v1 = vunpack.c.h.bf16 %v194_v58  ;;  %v2155_v39 = vunpack.i.h.bf16 %v3448_v9  ;;  %v4366_v32 = vld [vmem:[#allocation5_spill] sm:$0xff]  ;;  %v4370_v20 = vld [vmem:[#allocation7_spill] sm:$0xff]  ;;  %p2781_p12 = pnand %p2780_p11, %p2905_p5 }
  0xfb   : > { %v2378_v38 = vpop.permute.xlu0 %2377  ;;  %2672 = vrot.lane.b32.xlu1 %v3230_v37, %s2846_s29  ;;  %2048 = vmatprep.mubr.msk.bf16.mxu0 %vm1555_vm11, %v1519_v12  ;;  %v3845_v6 = vpack.i.bf16 %v756_v50, %v3758_v35  ;;  %v2154_v43 = vunpack.i.l.bf16 %v3448_v9  ;;  %v3850_v48 = vsel %vm476_vm1, %v853_v61, %v854_v33  ;;  %v3853_v18 = vsel %vm476_vm1, %v854_v33, %v856_v31 }
  0xfc   : > { %v2380_v40 = vunpack.i.h.bf16 %v2378_v38  ;;  %v2379_v27 = vunpack.i.l.bf16 %v2378_v38  ;;  %v1261_v13 = vsel %vm1255_vm3, %v4365_v21, %v2150_v16  ;;  %v1260_v12 = vsel %vm1255_vm3, %v4366_v32, %v2149_v19  ;;  %v4369_v38 = vld [vmem:[#allocation8_spill] sm:$0xff]  ;;  %p2782_p13 = pneg %p2781_p12 }
  0xfd   : > { %2667 = vrot.lane.b32.xlu0 %v4362_v49, %s2846_s29  ;;  %v2393_v59 = vpop.permute.xlu1 %2392  ;;  %v250_v49 = vunpack.c.l.bf16 %v3825_v51  ;;  %v2235_v26 = vunpack.i.h.bf16 %v4367_v55  ;;  %v2234_v35 = vunpack.i.l.bf16 %v4367_v55  ;;  %v2230_v50 = vunpack.i.h.bf16 %v4368_v5 }
  0xfe   : > { %v1489_v41 = vsel %vm1486_vm10, %v1456_v62, %v2379_v27  ;;  %v1490_v57 = vsel %vm1486_vm10, %v1457_v45, %v2380_v40  ;;  %v2229_v61 = vunpack.i.l.bf16 %v4368_v5  ;;  %v1053_v36 = vrot.slane %v3835_v24, 1 }
  0xff   : > { %v1520_v60 = vpack.c.bf16 %v1490_v57, %v1489_v41  ;;  %v3840_v7 = vpop.permute.xlu0 %2387  ;;  %2682 = vrot.lane.b32.xlu1 %v3374_v29, %s2847_s4  ;;  %v1054_v30 = vrot.slane %v3837_v1, 1  ;;  %v1263_v33 = vsel %vm1255_vm3, %v4369_v38, %v2155_v39  ;;  %v2310_v15 = vunpack.i.h.bf16 %v3682_v63 }
 0x100   : > { %v2309_v31 = vunpack.i.l.bf16 %v3682_v63  ;;  %v1262_v0 = vsel %vm1255_vm3, %v4370_v20, %v2154_v43  ;;  %v2314_v40 = vunpack.i.l.bf16 %v3680_v44  ;;  %v2385_v27 = vunpack.i.h.bf16 %v3804_v10 }
 0x101   : > { %2677 = vrot.lane.b32.xlu0 %v3358_v14, %s2847_s4  ;;  %2049 = vmatmul.mubr.msk.bf16.vlgmr.msra.gmra.mrb[0].mxu0 %vm1555_vm11, %v1520_v60  ;;  %v2403_v9 = vpop.permute.xlu1 %2402  ;;  %v1056_v14 = vrot.slane %v250_v49, 1  ;;  %v2384_v16 = vunpack.i.l.bf16 %v3804_v10  ;;  %v1296_v19 = vsel %vm1288_vm4, %v1263_v33, %v2235_v26  ;;  %v1295_v63 = vsel %vm1288_vm4, %v1262_v0, %v2234_v35  ;;  %v4371_v35 = vld [vmem:[#allocation28_spill] sm:$0xff] }
 0x102   : > { %v2395_v62 = vunpack.i.h.bf16 %v2393_v59  ;;  %v2394_v45 = vunpack.i.l.bf16 %v2393_v59  ;;  %v1294_v57 = vsel %vm1288_vm4, %v1261_v13, %v2230_v50  ;;  %v1293_v39 = vsel %vm1288_vm4, %v1260_v12, %v2229_v61 }
 0x103   : > { %v2398_v58 = vpop.permute.xlu0 %2397  ;;  %2692 = vrot.lane.b32.xlu1 %v3737_v42, %s2848_s7  ;;  %v2405_v60 = vunpack.i.h.bf16 %v2403_v9  ;;  %v2404_v43 = vunpack.i.l.bf16 %v2403_v9  ;;  %v1326_v21 = vsel %vm1321_vm5, %v1293_v39, %v2309_v31  ;;  %v1327_v10 = vsel %vm1321_vm5, %v1294_v57, %v2310_v15 }
 0x104   : > { %v2315_v59 = vunpack.i.h.bf16 %v3680_v44  ;;  %v1359_v13 = vsel %vm1354_vm6, %v1326_v21, %v2384_v16  ;;  %v1360_v12 = vsel %vm1354_vm6, %v1327_v10, %v2385_v27  ;;  %v2390_v50 = vunpack.i.h.bf16 %v3840_v7 }
 0x105   : > { %2687 = vrot.lane.b32.xlu0 %v3713_v28, %s2848_s7  ;;  %v2413_v41 = vpop.permute.xlu1 %2412  ;;  %v1328_v28 = vsel %vm1321_vm5, %v1295_v63, %v2314_v40  ;;  %v1392_v9 = vsel %vm1387_vm7, %v1359_v13, %v2394_v45  ;;  %v1393_v5 = vsel %vm1387_vm7, %v1360_v12, %v2395_v62  ;;  %v2389_v61 = vunpack.i.l.bf16 %v3840_v7  ;;  %v4372_v63 = vld [vmem:[#allocation29_spill] sm:$0xff] }
 0x106   : > { %v2415_v32 = vunpack.i.h.bf16 %v2413_v41  ;;  %v2414_v55 = vunpack.i.l.bf16 %v2413_v41  ;;  %v1425_v44 = vsel %vm1420_vm8, %v1392_v9, %v2404_v43  ;;  %v1426_v33 = vsel %vm1420_vm8, %v1393_v5, %v2405_v60 }
 0x107   : > { %v2408_v26 = vpop.permute.xlu0 %2407  ;;  %2702 = vrot.lane.b32.xlu1 %v4371_v35, %s2849_s16  ;;  %v2400_v20 = vunpack.i.h.bf16 %v2398_v58  ;;  %v2399_v0 = vunpack.i.l.bf16 %v2398_v58  ;;  %v1329_v41 = vsel %vm1321_vm5, %v1296_v19, %v2315_v59  ;;  %v1361_v21 = vsel %vm1354_vm6, %v1328_v28, %v2389_v61 }
 0x108   : > { %v1458_v40 = vsel %vm1453_vm9, %v1425_v44, %v2414_v55  ;;  %v1459_v27 = vsel %vm1453_vm9, %v1426_v33, %v2415_v32  ;;  %v2410_v7 = vunpack.i.h.bf16 %v2408_v26  ;;  %v2409_v62 = vunpack.i.l.bf16 %v2408_v26  ;;  %v4373_v55 = vld [vmem:[#allocation9_spill] sm:$0xff]  ;;  %v4374_v44 = vld [vmem:[#allocation11_spill] sm:$0xff] }
 0x109   : > { %2697 = vrot.lane.b32.xlu0 %v3230_v37, %s2849_s16  ;;  %v2423_v38 = vpop.permute.xlu1 %2422  ;;  %v1362_v43 = vsel %vm1354_vm6, %v1329_v41, %v2390_v50  ;;  %v3917_v10 = vsel %vm299_vm0, %v1053_v36, %v1054_v30  ;;  %v3920_v32 = vsel %vm299_vm0, %v1054_v30, %v1056_v14  ;;  %v2165_v19 = vunpack.i.h.bf16 %v4373_v55  ;;  %v4378_v41 = vld [vmem:[#allocation16_spill] sm:$0xff] }
 0x10a   : > { %v2425_v15 = vunpack.i.h.bf16 %v2423_v38  ;;  %v2424_v31 = vunpack.i.l.bf16 %v2423_v38  ;;  %v1394_v26 = vsel %vm1387_vm7, %v1361_v21, %v2399_v0  ;;  %v1395_v59 = vsel %vm1387_vm7, %v1362_v43, %v2400_v20 }
 0x10b   : > { %v2418_v16 = vpop.permute.xlu0 %2417  ;;  %2712 = vrot.lane.b32.xlu1 %v4372_v63, %s2850_s17  ;;  %v1427_v36 = vsel %vm1420_vm8, %v1394_v26, %v2409_v62  ;;  %v1428_v28 = vsel %vm1420_vm8, %v1395_v59, %v2410_v7  ;;  %v1155_v50 = vrot.slane %v3837_v1, 2  ;;  %v1157_v61 = vrot.slane %v250_v49, 2  ;;  %v4375_v49 = vld [vmem:[#allocation13_spill] sm:$0xff]  ;;  %v4376_v7 = vld [vmem:[#allocation14_spill] sm:$0xff] }
 0x10c   : > { %v1491_v37 = vsel %vm1486_vm10, %v1458_v40, %v2424_v31  ;;  %v1492_v45 = vsel %vm1486_vm10, %v1459_v27, %v2425_v15  ;;  %v2420_v39 = vunpack.i.h.bf16 %v2418_v16  ;;  %v2419_v60 = vunpack.i.l.bf16 %v2418_v16 }
 0x10d   : > { %v1521_v57 = vpack.c.bf16 %v1492_v45, %v1491_v37  ;;  %2707 = vrot.lane.b32.xlu0 %v3374_v29, %s2850_s17  ;;  %v3912_v58 = vpop.permute.xlu1 %2432  ;;  %v1154_v29 = vrot.slane %v3835_v24, 2  ;;  %v2164_v38 = vunpack.i.l.bf16 %v4373_v55  ;;  %v2160_v33 = vunpack.i.h.bf16 %v4374_v44 }
 0x10e   : > { %v1460_v12 = vsel %vm1453_vm9, %v1427_v36, %v2419_v60  ;;  %v1461_v9 = vsel %vm1453_vm9, %v1428_v28, %v2420_v39  ;;  %v2159_v20 = vunpack.i.l.bf16 %v4374_v44  ;;  %v2751_v51 = vpack.i.bf16 %v3837_v1, %v3835_v24  ;;  %v4377_v1 = vld [vmem:[#allocation12_spill] sm:$0xff]  ;;  %v4379_v39 = vld [vmem:[#allocation19_spill] sm:$0xff] }
 0x10f   : > { %v2428_v13 = vpop.permute.xlu0 %2427  ;;  %2722 = vrot.lane.b32.xlu1 %v3742_v22, %s2845_s28  ;;  %2052 = vmatprep.mubr.msk.bf16.mxu0 %vm1555_vm11, %v1521_v57  ;;  %v1267_v27 = vsel %vm1255_vm3, %v4375_v49, %v2165_v19  ;;  %v2761_v16 = vpack.i.bf16 %v3920_v32, %v3917_v10  ;;  %v2245_v62 = vunpack.i.h.bf16 %v4376_v7  ;;  %v2244_v37 = vunpack.i.l.bf16 %v4376_v7 }
 0x110   : > { %v2430_v30 = vunpack.i.h.bf16 %v2428_v13  ;;  %v2429_v14 = vunpack.i.l.bf16 %v2428_v13  ;;  %v3966_v24 = vsel %vm476_vm1, %v1155_v50, %v1157_v61  ;;  %v1266_v45 = vsel %vm1255_vm3, %v4377_v1, %v2164_v38 }
 0x111   : > { %2717 = vrot.lane.b32.xlu0 %v3737_v42, %s2845_s28  ;;  %v2443_v5 = vpop.permute.xlu1 %2442  ;;  %v3949_v42 = vpack.i.bf16 %v3853_v18, %v3850_v48  ;;  %v3963_v18 = vsel %vm476_vm1, %v1154_v29, %v1155_v50  ;;  %v1265_v57 = vsel %vm1255_vm3, %v4378_v41, %v2160_v33  ;;  %v2240_v60 = vunpack.i.h.bf16 %v4379_v39  ;;  %s4182_s28 = scalar_lea.hbm %s4226_s2, %s1976_s23 }
 0x112   : > { %v1493_v15 = vsel %vm1486_vm10, %v1460_v12, %v2429_v14  ;;  %v1494_v31 = vsel %vm1486_vm10, %v1461_v9, %v2430_v30  ;;  %v2239_v43 = vunpack.i.l.bf16 %v4379_v39  ;;  %v2320_v10 = vunpack.i.h.bf16 %v3690_v17 }
 0x113   : > { %v1522_v0 = vpack.c.bf16 %v1494_v31, %v1493_v15  ;;  %v3943_v40 = vpop.permute.xlu0 %2437  ;;  %2732 = vrot.lane.b32.xlu1 %v3845_v6, %s2846_s29  ;;  %v2319_v32 = vunpack.i.l.bf16 %v3690_v17  ;;  %v2324_v19 = vunpack.i.l.bf16 %v3687_v52  ;;  %v2435_v26 = vunpack.i.h.bf16 %v3912_v58 }
 0x114   : > { %v2434_v59 = vunpack.i.l.bf16 %v3912_v58  ;;  %v2771_v13 = vpack.i.bf16 %v3966_v24, %v3963_v18  ;;  %v1300_v29 = vsel %vm1288_vm4, %v1267_v27, %v2245_v62  ;;  %v1299_v36 = vsel %vm1288_vm4, %v1266_v45, %v2244_v37 }
 0x115   : > { %2727 = vrot.lane.b32.xlu0 %v4371_v35, %s2846_s29  ;;  %2053 = vmatmul.mubr.msk.bf16.gmra.mrb[4].mxu0 %vm1555_vm11, %v1522_v0  ;;  %v2453_v48 = vpop.permute.xlu1 %2452  ;;  %v4380_v35 = vld [vmem:[#allocation15_spill] sm:$0xff]  ;;  %v2445_v28 = vunpack.i.h.bf16 %v2443_v5  ;;  %v2444_v30 = vunpack.i.l.bf16 %v2443_v5  ;;  %v1298_v12 = vsel %vm1288_vm4, %v1265_v57, %v2240_v60  ;;  %v2325_v5 = vunpack.i.h.bf16 %v3687_v52  ;;  %s1878_s29 = scalar_lea.sflag [#allocation3], %s134_s21 }
 0x116   : > { %v1264_v21 = vsel %vm1255_vm3, %v4380_v35, %v2159_v20  ;;  %v2455_v9 = vunpack.i.h.bf16 %v2453_v48  ;;  %v2454_v50 = vunpack.i.l.bf16 %v2453_v48  ;;  %v1331_v61 = vsel %vm1321_vm5, %v1298_v12, %v2320_v10 }
 0x117   : > { %v2448_v55 = vpop.permute.xlu0 %2447  ;;  %2742 = vrot.lane.b32.xlu1 %v3949_v42, %s2847_s4  ;;  %v1297_v14 = vsel %vm1288_vm4, %v1264_v21, %v2239_v43  ;;  %v1364_v31 = vsel %vm1354_vm6, %v1331_v61, %v2435_v26  ;;  %v2440_v49 = vunpack.i.h.bf16 %v3943_v40  ;;  %v2439_v27 = vunpack.i.l.bf16 %v3943_v40 }
 0x118   : > { %v1330_v58 = vsel %vm1321_vm5, %v1297_v14, %v2319_v32  ;;  %v1397_v0 = vsel %vm1387_vm7, %v1364_v31, %v2445_v28  ;;  %v2450_v48 = vunpack.i.h.bf16 %v2448_v55  ;;  %v2449_v18 = vunpack.i.l.bf16 %v2448_v55 }
 0x119   : > { %2737 = vrot.lane.b32.xlu0 %v4372_v63, %s2847_s4  ;;  %v2463_v17 = vpop.permute.xlu1 %2462  ;;  %v1332_v63 = vsel %vm1321_vm5, %v1299_v36, %v2324_v19  ;;  %v1363_v15 = vsel %vm1354_vm6, %v1330_v58, %v2434_v59  ;;  %v1430_v7 = vsel %vm1420_vm8, %v1397_v0, %v2455_v9  ;;  %v1333_v39 = vsel %vm1321_vm5, %v1300_v29, %v2325_v5  ;;  %s2785_s4 = scalar_lea.vmem %s2784_s3, 64 }
 0x11a   : > { %v2465_v38 = vunpack.i.h.bf16 %v2463_v17  ;;  %v2464_v44 = vunpack.i.l.bf16 %v2463_v17  ;;  %v1396_v20 = vsel %vm1387_vm7, %v1363_v15, %v2444_v30  ;;  %v1366_v10 = vsel %vm1354_vm6, %v1333_v39, %v2440_v49  ;;  %p2787_p1 = scmp.lt.s32.totalorder %s2785_s4, %s2779_s30 }
 0x11b   : > { %v2458_v33 = vpop.permute.xlu0 %2457  ;;  %2752 = vrot.lane.b32.xlu1 %v2751_v51, %s2848_s7  ;;  %v1429_v52 = vsel %vm1420_vm8, %v1396_v20, %v2454_v50  ;;  %v1365_v32 = vsel %vm1354_vm6, %v1332_v63, %v2439_v27  ;;  %v1399_v55 = vsel %vm1387_vm7, %v1366_v10, %v2450_v48 }
 0x11c   : > { %v1462_v24 = vsel %vm1453_vm9, %v1429_v52, %v2464_v44  ;;  %v1463_v1 = vsel %vm1453_vm9, %v1430_v7, %v2465_v38  ;;  %v2460_v40 = vunpack.i.h.bf16 %v2458_v33  ;;  %v2459_v41 = vunpack.i.l.bf16 %v2458_v33  ;;  %p2788_p2 = por %p2787_p1, %p2786_p0 }
 0x11d   : > { %2747 = vrot.lane.b32.xlu0 %v3742_v22, %s2848_s7  ;;  %v2473_v51 = vpop.permute.xlu1 %2472 }
 0x11e   : > { %v2475_v62 = vunpack.i.h.bf16 %v2473_v51  ;;  %v2474_v37 = vunpack.i.l.bf16 %v2473_v51  ;;  %v1432_v59 = vsel %vm1420_vm8, %v1399_v55, %v2460_v40  ;;  %p2789_p3 = pnand %p2788_p2, %p2782_p13 }
 0x11f   : > { %v2468_v45 = vpop.permute.xlu0 %2467  ;;  %2762 = vrot.lane.b32.xlu1 %v2761_v16, %s2849_s16  ;;  %v1398_v16 = vsel %vm1387_vm7, %v1365_v32, %v2449_v18 }
 0x120   : > { %v1495_v22 = vsel %vm1486_vm10, %v1462_v24, %v2474_v37  ;;  %v1496_v57 = vsel %vm1486_vm10, %v1463_v1, %v2475_v62  ;;  %v2470_v43 = vunpack.i.h.bf16 %v2468_v45  ;;  %v2469_v35 = vunpack.i.l.bf16 %v2468_v45 }
 0x121   : > { %v1523_v60 = vpack.c.bf16 %v1496_v57, %v1495_v22  ;;  %2757 = vrot.lane.b32.xlu0 %v3845_v6, %s2849_s16  ;;  %v2483_v21 = vpop.permute.xlu1 %2482  ;;  %v1431_v26 = vsel %vm1420_vm8, %v1398_v16, %v2459_v41 }
 0x122   : > { %v1464_v36 = vsel %vm1453_vm9, %v1431_v26, %v2469_v35  ;;  %v1465_v28 = vsel %vm1453_vm9, %v1432_v59, %v2470_v43  ;;  %v2485_v58 = vunpack.i.h.bf16 %v2483_v21  ;;  %v2484_v61 = vunpack.i.l.bf16 %v2483_v21 }
 0x123   : > { %v2478_v19 = vpop.permute.xlu0 %2477  ;;  %2772 = vrot.lane.b32.xlu1 %v2771_v13, %s2850_s17  ;;  %2056 = vmatprep.mubr.msk.bf16.mxu0 %vm1555_vm11, %v1523_v60 }
 0x124   : > { %v2480_v29 = vunpack.i.h.bf16 %v2478_v19  ;;  %v2479_v6 = vunpack.i.l.bf16 %v2478_v19  ;;  %v1337_v20 = vsel %vm1321_vm5, %v3544_v11, %v2485_v58  ;;  %v1336_v0 = vsel %vm1321_vm5, %v3547_v23, %v2484_v61 }
 0x125   : > { %2767 = vrot.lane.b32.xlu0 %v3949_v42, %s2850_s17  ;;  %v2493_v30 = vpop.permute.xlu1 %2492 }
 0x126   : > { %v1497_v17 = vsel %vm1486_vm10, %v1464_v36, %v2479_v6  ;;  %v1498_v13 = vsel %vm1486_vm10, %v1465_v28, %v2480_v29  ;;  %v2495_v44 = vunpack.i.h.bf16 %v2493_v30  ;;  %v2494_v33 = vunpack.i.l.bf16 %v2493_v30 }
 0x127   : > { %v1524_v14 = vpack.c.bf16 %v1498_v13, %v1497_v17  ;;  %v2488_v12 = vpop.permute.xlu0 %2487 }
 0x128   : > { %v2490_v63 = vunpack.i.h.bf16 %v2488_v12  ;;  %v2489_v15 = vunpack.i.l.bf16 %v2488_v12  ;;  %v1369_v52 = vsel %vm1354_vm6, %v1336_v0, %v2494_v33  ;;  %v1370_v7 = vsel %vm1354_vm6, %v1337_v20, %v2495_v44 }
 0x129   : > { %2057 = vmatmul.mubr.msk.bf16.gmra.mrb[8].mxu0 %vm1555_vm11, %v1524_v14  ;;  %v2503_v9 = vpop.permute.xlu1 %2502 }
 0x12a   : > { %v2505_v42 = vunpack.i.h.bf16 %v2503_v9  ;;  %v2504_v31 = vunpack.i.l.bf16 %v2503_v9  ;;  %v1367_v11 = vsel %vm1354_vm6, %v3722_v47, %v2489_v15  ;;  %v1368_v23 = vsel %vm1354_vm6, %v3726_v56, %v2490_v63 }
 0x12b   : > { %v2498_v50 = vpop.permute.xlu0 %2497 }
 0x12c   : > { %v2500_v49 = vunpack.i.h.bf16 %v2498_v50  ;;  %v2499_v27 = vunpack.i.l.bf16 %v2498_v50  ;;  %v1402_v40 = vsel %vm1387_vm7, %v1369_v52, %v2504_v31  ;;  %v1403_v41 = vsel %vm1387_vm7, %v1370_v7, %v2505_v42 }
 0x12d   : > { %v2513_v38 = vpop.permute.xlu1 %2512 }
 0x12e   : > { %v2515_v62 = vunpack.i.h.bf16 %v2513_v38  ;;  %v2514_v37 = vunpack.i.l.bf16 %v2513_v38  ;;  %v1400_v22 = vsel %vm1387_vm7, %v1367_v11, %v2499_v27  ;;  %v1401_v57 = vsel %vm1387_vm7, %v1368_v23, %v2500_v49 }
 0x12f   : > { %v2508_v5 = vpop.permute.xlu0 %2507 }
 0x130   : > { %v2510_v48 = vunpack.i.h.bf16 %v2508_v5  ;;  %v2509_v18 = vunpack.i.l.bf16 %v2508_v5  ;;  %v1435_v35 = vsel %vm1420_vm8, %v1402_v40, %v2514_v37  ;;  %v1436_v21 = vsel %vm1420_vm8, %v1403_v41, %v2515_v62 }
 0x131   : > { %v2523_v51 = vpop.permute.xlu1 %2522 }
 0x132   : > { %v2525_v24 = vunpack.i.h.bf16 %v2523_v51  ;;  %v2524_v1 = vunpack.i.l.bf16 %v2523_v51  ;;  %v1433_v32 = vsel %vm1420_vm8, %v1400_v22, %v2509_v18  ;;  %v1434_v56 = vsel %vm1420_vm8, %v1401_v57, %v2510_v48 }
 0x133   : > { %v2518_v45 = vpop.permute.xlu0 %2517 }
 0x134   : > { %v2520_v39 = vunpack.i.h.bf16 %v2518_v45  ;;  %v2519_v60 = vunpack.i.l.bf16 %v2518_v45  ;;  %v1468_v16 = vsel %vm1453_vm9, %v1435_v35, %v2524_v1  ;;  %v1469_v55 = vsel %vm1453_vm9, %v1436_v21, %v2525_v24 }
 0x135   : > { %v2533_v43 = vpop.permute.xlu1 %2532 }
 0x136   : > { %v2535_v10 = vunpack.i.h.bf16 %v2533_v43  ;;  %v2534_v47 = vunpack.i.l.bf16 %v2533_v43  ;;  %v1466_v36 = vsel %vm1453_vm9, %v1433_v32, %v2519_v60  ;;  %v1467_v28 = vsel %vm1453_vm9, %v1434_v56, %v2520_v39 }
 0x137   : > { %v2528_v19 = vpop.permute.xlu0 %2527 }
 0x138   : > { %v1501_v26 = vsel %vm1486_vm10, %v1468_v16, %v2534_v47  ;;  %v1502_v59 = vsel %vm1486_vm10, %v1469_v55, %v2535_v10  ;;  %v2530_v29 = vunpack.i.h.bf16 %v2528_v19  ;;  %v2529_v6 = vunpack.i.l.bf16 %v2528_v19 }
 0x139   : > { %v1526_v30 = vpack.c.bf16 %v1502_v59, %v1501_v26  ;;  %v2543_v17 = vpop.permute.xlu1 %2542 }
 0x13a   : > { %v1499_v13 = vsel %vm1486_vm10, %v1466_v36, %v2529_v6  ;;  %v1500_v14 = vsel %vm1486_vm10, %v1467_v28, %v2530_v29  ;;  %v2545_v38 = vunpack.i.h.bf16 %v2543_v17  ;;  %v2544_v44 = vunpack.i.l.bf16 %v2543_v17 }
 0x13b   : > { %v1525_v12 = vpack.c.bf16 %v1500_v14, %v1499_v13  ;;  %v2538_v9 = vpop.permute.xlu0 %2537 }
 0x13c   : > { %v2540_v5 = vunpack.i.h.bf16 %v2538_v9  ;;  %v2539_v63 = vunpack.i.l.bf16 %v2538_v9  ;;  %v1341_v20 = vsel %vm1321_vm5, %v3571_v4, %v2545_v38  ;;  %v1340_v0 = vsel %vm1321_vm5, %v3574_v3, %v2544_v44 }
 0x13d   : > { %2060 = vmatprep.mubr.msk.bf16.mxu0 %vm1555_vm11, %v1525_v12  ;;  %v2553_v50 = vpop.permute.xlu1 %2552 }
 0x13e   : > { %2061 = vmatmul.mubr.msk.bf16.gmra.mrb[12].mxu0 %vm1555_vm11, %v1526_v30  ;;  %v2555_v42 = vunpack.i.h.bf16 %v2553_v50  ;;  %v2554_v31 = vunpack.i.l.bf16 %v2553_v50  ;;  %v1338_v62 = vsel %vm1321_vm5, %v3585_v2, %v2539_v63  ;;  %v1339_v37 = vsel %vm1321_vm5, %v3588_v34, %v2540_v5 }
 0x13f   : > { %v2548_v58 = vpop.permute.xlu0 %2547 }
 0x140   : > { %v2550_v27 = vunpack.i.h.bf16 %v2548_v58  ;;  %v2549_v51 = vunpack.i.l.bf16 %v2548_v58  ;;  %v1373_v1 = vsel %vm1354_vm6, %v1340_v0, %v2554_v31  ;;  %v1374_v4 = vsel %vm1354_vm6, %v1341_v20, %v2555_v42 }
 0x141   : > { %v2563_v61 = vpop.permute.xlu1 %2562 }
 0x142   : > { %v2565_v52 = vunpack.i.h.bf16 %v2563_v61  ;;  %v2564_v7 = vunpack.i.l.bf16 %v2563_v61  ;;  %v1371_v57 = vsel %vm1354_vm6, %v1338_v62, %v2549_v51  ;;  %v1372_v2 = vsel %vm1354_vm6, %v1339_v37, %v2550_v27 }
 0x143   : > { %v2558_v33 = vpop.permute.xlu0 %2557 }
 0x144   : > { %v2560_v48 = vunpack.i.h.bf16 %v2558_v33  ;;  %v2559_v18 = vunpack.i.l.bf16 %v2558_v33  ;;  %v1406_v34 = vsel %vm1387_vm7, %v1373_v1, %v2564_v7  ;;  %v1407_v39 = vsel %vm1387_vm7, %v1374_v4, %v2565_v52 }
 0x145   : > { %v2573_v15 = vpop.permute.xlu1 %2572 }
 0x146   : > { %v2575_v45 = vunpack.i.h.bf16 %v2573_v15  ;;  %v2574_v3 = vunpack.i.l.bf16 %v2573_v15  ;;  %v1404_v60 = vsel %vm1387_vm7, %v1371_v57, %v2559_v18  ;;  %v1405_v43 = vsel %vm1387_vm7, %v1372_v2, %v2560_v48 }
 0x147   : > { %v2568_v49 = vpop.permute.xlu0 %2567 }
 0x148   : > { %v2570_v11 = vunpack.i.h.bf16 %v2568_v49  ;;  %v2569_v23 = vunpack.i.l.bf16 %v2568_v49  ;;  %v1439_v47 = vsel %vm1420_vm8, %v1406_v34, %v2574_v3  ;;  %v1440_v32 = vsel %vm1420_vm8, %v1407_v39, %v2575_v45 }
 0x149   : > { %v2583_v24 = vpop.permute.xlu1 %2582 }
 0x14a   : > { %v2585_v40 = vunpack.i.h.bf16 %v2583_v24  ;;  %v2584_v41 = vunpack.i.l.bf16 %v2583_v24  ;;  %v1437_v55 = vsel %vm1420_vm8, %v1404_v60, %v2569_v23  ;;  %v1438_v19 = vsel %vm1420_vm8, %v1405_v43, %v2570_v11 }
 0x14b   : > { %v2578_v22 = vpop.permute.xlu0 %2577 }
 0x14c   : > { %v2580_v35 = vunpack.i.h.bf16 %v2578_v22  ;;  %v2579_v21 = vunpack.i.l.bf16 %v2578_v22  ;;  %v1472_v26 = vsel %vm1453_vm9, %v1439_v47, %v2584_v41  ;;  %v1473_v59 = vsel %vm1453_vm9, %v1440_v32, %v2585_v40 }
 0x14d   : > { %v2593_v10 = vpop.permute.xlu1 %2592 }
 0x14e   : > { %v2595_v56 = vunpack.i.h.bf16 %v2593_v10  ;;  %v2594_v16 = vunpack.i.l.bf16 %v2593_v10  ;;  %v1470_v14 = vsel %vm1453_vm9, %v1437_v55, %v2579_v21  ;;  %v1471_v12 = vsel %vm1453_vm9, %v1438_v19, %v2580_v35 }
 0x14f   : > { %v2588_v29 = vpop.permute.xlu0 %2587 }
 0x150   : > { %v1505_v6 = vsel %vm1486_vm10, %v1472_v26, %v2594_v16  ;;  %v1506_v36 = vsel %vm1486_vm10, %v1473_v59, %v2595_v56  ;;  %v2590_v28 = vunpack.i.h.bf16 %v2588_v29  ;;  %v2589_v30 = vunpack.i.l.bf16 %v2588_v29 }
 0x151   : > { %v1528_v17 = vpack.c.bf16 %v1506_v36, %v1505_v6  ;;  %v2603_v13 = vpop.permute.xlu1 %2602 }
 0x152   : > { %v1503_v9 = vsel %vm1486_vm10, %v1470_v14, %v2589_v30  ;;  %v1504_v50 = vsel %vm1486_vm10, %v1471_v12, %v2590_v28  ;;  %v2605_v5 = vunpack.i.h.bf16 %v2603_v13  ;;  %v2604_v63 = vunpack.i.l.bf16 %v2603_v13 }
 0x153   : > { %v2598_v58 = vpop.permute.xlu0 %2597  ;;  %v1527_v61 = vpack.c.bf16 %v1504_v50, %v1503_v9 }
 0x154   : > { %v2600_v42 = vunpack.i.h.bf16 %v2598_v58  ;;  %v2599_v31 = vunpack.i.l.bf16 %v2598_v58  ;;  %v1345_v27 = vsel %vm1321_vm5, %v3599_v46, %v2605_v5  ;;  %v1344_v51 = vsel %vm1321_vm5, %v3602_v25, %v2604_v63 }
 0x155   : > { %2064 = vmatprep.mubr.msk.bf16.mxu1 %vm1555_vm11, %v1527_v61  ;;  %v2613_v38 = vpop.permute.xlu1 %2612 }
 0x156   : > { %2065 = vmatmul.mubr.msk.bf16.vlgmr.msra.gmra.mrb[0].mxu1 %vm1555_vm11, %v1528_v17  ;;  %v2615_v0 = vunpack.i.h.bf16 %v2613_v38  ;;  %v2614_v49 = vunpack.i.l.bf16 %v2613_v38  ;;  %v1342_v18 = vsel %vm1321_vm5, %v3613_v53, %v2599_v31  ;;  %v1343_v24 = vsel %vm1321_vm5, %v3616_v8, %v2600_v42 }
 0x157   : > { %v2608_v44 = vpop.permute.xlu0 %2607 }
 0x158   : > { %v2610_v7 = vunpack.i.h.bf16 %v2608_v44  ;;  %v2609_v62 = vunpack.i.l.bf16 %v2608_v44  ;;  %v1377_v3 = vsel %vm1354_vm6, %v1344_v51, %v2614_v49  ;;  %v1378_v46 = vsel %vm1354_vm6, %v1345_v27, %v2615_v0  ;;  %v4381_v27 = vld [vmem:[#allocation18_spill] sm:$0xff] }
 0x159   : > { %v2623_v33 = vpop.permute.xlu1 %2622 }
 0x15a   : > { %v2625_v37 = vunpack.i.h.bf16 %v2623_v33  ;;  %v2624_v48 = vunpack.i.l.bf16 %v2623_v33  ;;  %v1375_v2 = vsel %vm1354_vm6, %v1342_v18, %v2609_v62  ;;  %v1376_v53 = vsel %vm1354_vm6, %v1343_v24, %v2610_v7  ;;  %v4382_v18 = vld [vmem:[#allocation21_spill] sm:$0xff] }
 0x15b   : > { %v2618_v15 = vpop.permute.xlu0 %2617 }
 0x15c   : > { %v2620_v1 = vunpack.i.h.bf16 %v2618_v15  ;;  %v2619_v4 = vunpack.i.l.bf16 %v2618_v15  ;;  %v1410_v8 = vsel %vm1387_vm7, %v1377_v3, %v2624_v48  ;;  %v1411_v34 = vsel %vm1387_vm7, %v1378_v46, %v2625_v37 }
 0x15d   : > { %v2633_v20 = vpop.permute.xlu1 %2632 }
 0x15e   : > { %v2635_v11 = vunpack.i.h.bf16 %v2633_v20  ;;  %v2634_v25 = vunpack.i.l.bf16 %v2633_v20  ;;  %v1408_v39 = vsel %vm1387_vm7, %v1375_v2, %v2619_v4  ;;  %v1409_v60 = vsel %vm1387_vm7, %v1376_v53, %v2620_v1  ;;  %v4383_v1 = vld [vmem:[#allocation20_spill] sm:$0xff] }
 0x15f   : > { %v2628_v52 = vpop.permute.xlu0 %2627 }
 0x160   : > { %v2630_v23 = vunpack.i.h.bf16 %v2628_v52  ;;  %v2629_v40 = vunpack.i.l.bf16 %v2628_v52  ;;  %v1443_v10 = vsel %vm1420_vm8, %v1410_v8, %v2634_v25  ;;  %v1444_v47 = vsel %vm1420_vm8, %v1411_v34, %v2635_v11 }
 0x161   : > { %v2643_v45 = vpop.permute.xlu1 %2642 }
 0x162   : > { %v2645_v41 = vunpack.i.h.bf16 %v2643_v45  ;;  %v2644_v22 = vunpack.i.l.bf16 %v2643_v45  ;;  %v1441_v16 = vsel %vm1420_vm8, %v1408_v39, %v2629_v40  ;;  %v1442_v55 = vsel %vm1420_vm8, %v1409_v60, %v2630_v23 }
 0x163   : > { %v2638_v57 = vpop.permute.xlu0 %2637 }
 0x164   : > { %v2640_v43 = vunpack.i.h.bf16 %v2638_v57  ;;  %v2639_v35 = vunpack.i.l.bf16 %v2638_v57  ;;  %v1476_v19 = vsel %vm1453_vm9, %v1443_v10, %v2644_v22  ;;  %v1477_v26 = vsel %vm1453_vm9, %v1444_v47, %v2645_v41 }
 0x165   : > { %v2653_v21 = vpop.permute.xlu1 %2652 }
 0x166   : > { %v2655_v32 = vunpack.i.h.bf16 %v2653_v21  ;;  %v2654_v56 = vunpack.i.l.bf16 %v2653_v21  ;;  %v1474_v30 = vsel %vm1453_vm9, %v1441_v16, %v2639_v35  ;;  %v1475_v17 = vsel %vm1453_vm9, %v1442_v55, %v2640_v43 }
 0x167   : > { %v2648_v59 = vpop.permute.xlu0 %2647 }
 0x168   : > { %v1509_v29 = vsel %vm1486_vm10, %v1476_v19, %v2654_v56  ;;  %v1510_v6 = vsel %vm1486_vm10, %v1477_v26, %v2655_v32  ;;  %v2650_v36 = vunpack.i.h.bf16 %v2648_v59  ;;  %v2649_v28 = vunpack.i.l.bf16 %v2648_v59 }
 0x169   : > { %v1530_v13 = vpack.c.bf16 %v1510_v6, %v1509_v29  ;;  %v2663_v14 = vpop.permute.xlu1 %2662 }
 0x16a   : > { %v1507_v12 = vsel %vm1486_vm10, %v1474_v30, %v2649_v28  ;;  %v1508_v9 = vsel %vm1486_vm10, %v1475_v17, %v2650_v36  ;;  %v2665_v33 = vunpack.i.h.bf16 %v2663_v14  ;;  %v2664_v5 = vunpack.i.l.bf16 %v2663_v14 }
 0x16b   : > { %v1529_v50 = vpack.c.bf16 %v1508_v9, %v1507_v12  ;;  %v2658_v58 = vpop.permute.xlu0 %2657 }
 0x16c   : > { %v2660_v15 = vunpack.i.h.bf16 %v2658_v58  ;;  %v2659_v42 = vunpack.i.l.bf16 %v2658_v58  ;;  %v1349_v49 = vsel %vm1321_vm5, %v3627_v54, %v2665_v33  ;;  %v1348_v51 = vsel %vm1321_vm5, %v4381_v27, %v2664_v5  ;;  %v4384_v27 = vld [vmem:[#allocation23_spill] sm:$0xff] }
 0x16d   : > { %2068 = vmatprep.mubr.msk.bf16.mxu1 %vm1555_vm11, %v1529_v50  ;;  %v2673_v61 = vpop.permute.xlu1 %2672 }
 0x16e   : > { %2069 = vmatmul.mubr.msk.bf16.gmra.mrb[4].mxu1 %vm1555_vm11, %v1530_v13  ;;  %v2675_v20 = vunpack.i.h.bf16 %v2673_v61  ;;  %v2674_v0 = vunpack.i.l.bf16 %v2673_v61  ;;  %v1346_v24 = vsel %vm1321_vm5, %v4382_v18, %v2659_v42  ;;  %v1347_v4 = vsel %vm1321_vm5, %v4383_v1, %v2660_v15  ;;  %v4386_v1 = vld [vmem:[#allocation25_spill] sm:$0xff] }
 0x16f   : > { %v2668_v38 = vpop.permute.xlu0 %2667 }
 0x170   : > { %v2670_v7 = vunpack.i.h.bf16 %v2668_v38  ;;  %v2669_v62 = vunpack.i.l.bf16 %v2668_v38  ;;  %v1381_v11 = vsel %vm1354_vm6, %v1348_v51, %v2674_v0  ;;  %v1382_v54 = vsel %vm1354_vm6, %v1349_v49, %v2675_v20 }
 0x171   : > { %v2683_v44 = vpop.permute.xlu1 %2682 }
 0x172   : > { %v2685_v37 = vunpack.i.h.bf16 %v2683_v44  ;;  %v2684_v48 = vunpack.i.l.bf16 %v2683_v44  ;;  %v1379_v53 = vsel %vm1354_vm6, %v1346_v24, %v2669_v62  ;;  %v1380_v8 = vsel %vm1354_vm6, %v1347_v4, %v2670_v7 }
 0x173   : > { %v2678_v63 = vpop.permute.xlu0 %2677 }
 0x174   : > { %v2680_v45 = vunpack.i.h.bf16 %v2678_v63  ;;  %v2679_v3 = vunpack.i.l.bf16 %v2678_v63  ;;  %v1414_v34 = vsel %vm1387_vm7, %v1381_v11, %v2684_v48  ;;  %v1415_v39 = vsel %vm1387_vm7, %v1382_v54, %v2685_v37 }
 0x175   : > { %v2693_v31 = vpop.permute.xlu1 %2692 }
 0x176   : > { %v2695_v25 = vunpack.i.h.bf16 %v2693_v31  ;;  %v2694_v23 = vunpack.i.l.bf16 %v2693_v31  ;;  %v1412_v60 = vsel %vm1387_vm7, %v1379_v53, %v2679_v3  ;;  %v1413_v43 = vsel %vm1387_vm7, %v1380_v8, %v2680_v45  ;;  %v4387_v45 = vld [vmem:[#allocation24_spill] sm:$0xff] }
 0x177   : > { %v2688_v52 = vpop.permute.xlu0 %2687 }
 0x178   : > { %v2690_v40 = vunpack.i.h.bf16 %v2688_v52  ;;  %v2689_v41 = vunpack.i.l.bf16 %v2688_v52  ;;  %v1447_v47 = vsel %vm1420_vm8, %v1414_v34, %v2694_v23  ;;  %v1448_v32 = vsel %vm1420_vm8, %v1415_v39, %v2695_v25  ;;  %v4385_v52 = vld [vmem:[#allocation22_spill] sm:$0xff] }
 0x179   : > { %v2703_v46 = vpop.permute.xlu1 %2702 }
 0x17a   : > { %v2705_v22 = vunpack.i.h.bf16 %v2703_v46  ;;  %v2704_v57 = vunpack.i.l.bf16 %v2703_v46  ;;  %v1445_v55 = vsel %vm1420_vm8, %v1412_v60, %v2689_v41  ;;  %v1446_v19 = vsel %vm1420_vm8, %v1413_v43, %v2690_v40 }
 0x17b   : > { %v2698_v2 = vpop.permute.xlu0 %2697 }
 0x17c   : > { %v2700_v35 = vunpack.i.h.bf16 %v2698_v2  ;;  %v2699_v21 = vunpack.i.l.bf16 %v2698_v2  ;;  %v1480_v26 = vsel %vm1453_vm9, %v1447_v47, %v2704_v57  ;;  %v1481_v59 = vsel %vm1453_vm9, %v1448_v32, %v2705_v22 }
 0x17d   : > { %v2713_v10 = vpop.permute.xlu1 %2712 }
 0x17e   : > { %v2715_v56 = vunpack.i.h.bf16 %v2713_v10  ;;  %v2714_v16 = vunpack.i.l.bf16 %v2713_v10  ;;  %v1478_v17 = vsel %vm1453_vm9, %v1445_v55, %v2699_v21  ;;  %v1479_v13 = vsel %vm1453_vm9, %v1446_v19, %v2700_v35 }
 0x17f   : > { %v2708_v29 = vpop.permute.xlu0 %2707 }
 0x180   : > { %v1513_v6 = vsel %vm1486_vm10, %v1480_v26, %v2714_v16  ;;  %v1514_v36 = vsel %vm1486_vm10, %v1481_v59, %v2715_v56  ;;  %v2710_v28 = vunpack.i.h.bf16 %v2708_v29  ;;  %v2709_v30 = vunpack.i.l.bf16 %v2708_v29 }
 0x181   : > { %v1532_v14 = vpack.c.bf16 %v1514_v36, %v1513_v6  ;;  %v2723_v12 = vpop.permute.xlu1 %2722 }
 0x182   : > { %v1511_v9 = vsel %vm1486_vm10, %v1478_v17, %v2709_v30  ;;  %v1512_v50 = vsel %vm1486_vm10, %v1479_v13, %v2710_v28  ;;  %v2725_v5 = vunpack.i.h.bf16 %v2723_v12  ;;  %v2724_v63 = vunpack.i.l.bf16 %v2723_v12 }
 0x183   : > { %v1531_v58 = vpack.c.bf16 %v1512_v50, %v1511_v9  ;;  %v2718_v61 = vpop.permute.xlu0 %2717 }
 0x184   : > { %v2720_v42 = vunpack.i.h.bf16 %v2718_v61  ;;  %v2719_v31 = vunpack.i.l.bf16 %v2718_v61  ;;  %v1353_v51 = vsel %vm1321_vm5, %v4384_v27, %v2725_v5  ;;  %v1352_v7 = vsel %vm1321_vm5, %v4385_v52, %v2724_v63 }
 0x185   : > { %2072 = vmatprep.mubr.msk.bf16.mxu1 %vm1555_vm11, %v1531_v58  ;;  %v2733_v38 = vpop.permute.xlu1 %2732 }
 0x186   : > { %2073 = vmatmul.mubr.msk.bf16.gmra.mrb[8].mxu1 %vm1555_vm11, %v1532_v14  ;;  %v2735_v0 = vunpack.i.h.bf16 %v2733_v38  ;;  %v2734_v49 = vunpack.i.l.bf16 %v2733_v38  ;;  %v1350_v4 = vsel %vm1321_vm5, %v4386_v1, %v2719_v31  ;;  %v1351_v3 = vsel %vm1321_vm5, %v4387_v45, %v2720_v42 }
 0x187   : > { %v2728_v44 = vpop.permute.xlu0 %2727 }
 0x188   : > { %v2730_v37 = vunpack.i.h.bf16 %v2728_v44  ;;  %v2729_v48 = vunpack.i.l.bf16 %v2728_v44  ;;  %v1385_v25 = vsel %vm1354_vm6, %v1352_v7, %v2734_v49  ;;  %v1386_v23 = vsel %vm1354_vm6, %v1353_v51, %v2735_v0 }
 0x189   : > { %v2743_v33 = vpop.permute.xlu1 %2742 }
 0x18a   : > { %v2745_v18 = vunpack.i.h.bf16 %v2743_v33  ;;  %v2744_v24 = vunpack.i.l.bf16 %v2743_v33  ;;  %v1383_v34 = vsel %vm1354_vm6, %v1350_v4, %v2729_v48  ;;  %v1384_v39 = vsel %vm1354_vm6, %v1351_v3, %v2730_v37 }
 0x18b   : > { %v2738_v15 = vpop.permute.xlu0 %2737 }
 0x18c   : > { %v2740_v46 = vunpack.i.h.bf16 %v2738_v15  ;;  %v2739_v11 = vunpack.i.l.bf16 %v2738_v15  ;;  %v1418_v60 = vsel %vm1387_vm7, %v1385_v25, %v2744_v24  ;;  %v1419_v43 = vsel %vm1387_vm7, %v1386_v23, %v2745_v18 }
 0x18d   : > { %v2753_v20 = vpop.permute.xlu1 %2752 }
 0x18e   : > { %v2755_v40 = vunpack.i.h.bf16 %v2753_v20  ;;  %v2754_v41 = vunpack.i.l.bf16 %v2753_v20  ;;  %v1416_v35 = vsel %vm1387_vm7, %v1383_v34, %v2739_v11  ;;  %v1417_v21 = vsel %vm1387_vm7, %v1384_v39, %v2740_v46 }
 0x18f   : > { %v2748_v62 = vpop.permute.xlu0 %2747 }
 0x190   : > { %v2750_v22 = vunpack.i.h.bf16 %v2748_v62  ;;  %v2749_v57 = vunpack.i.l.bf16 %v2748_v62  ;;  %v1451_v56 = vsel %vm1420_vm8, %v1418_v60, %v2754_v41  ;;  %v1452_v16 = vsel %vm1420_vm8, %v1419_v43, %v2755_v40 }
 0x191   : > { %v2763_v54 = vpop.permute.xlu1 %2762 }
 0x192   : > { %v2765_v2 = vunpack.i.h.bf16 %v2763_v54  ;;  %v2764_v53 = vunpack.i.l.bf16 %v2763_v54  ;;  %v1449_v26 = vsel %vm1420_vm8, %v1416_v35, %v2749_v57  ;;  %v1450_v59 = vsel %vm1420_vm8, %v1417_v21, %v2750_v22 }
 0x193   : > { %v2758_v8 = vpop.permute.xlu0 %2757 }
 0x194   : > { %v2760_v10 = vunpack.i.h.bf16 %v2758_v8  ;;  %v2759_v47 = vunpack.i.l.bf16 %v2758_v8  ;;  %v1484_v29 = vsel %vm1453_vm9, %v1451_v56, %v2764_v53  ;;  %v1485_v6 = vsel %vm1453_vm9, %v1452_v16, %v2765_v2 }
 0x195   : > { %v2773_v32 = vpop.permute.xlu1 %2772 }
 0x196   : > { %v2775_v55 = vunpack.i.h.bf16 %v2773_v32  ;;  %v2774_v19 = vunpack.i.l.bf16 %v2773_v32  ;;  %v1482_v14 = vsel %vm1453_vm9, %v1449_v26, %v2759_v47  ;;  %v1483_v12 = vsel %vm1453_vm9, %v1450_v59, %v2760_v10 }
 0x197   : > { %v2768_v36 = vpop.permute.xlu0 %2767 }
 0x198   : > { %v1517_v28 = vsel %vm1486_vm10, %v1484_v29, %v2774_v19  ;;  %v1518_v30 = vsel %vm1486_vm10, %v1485_v6, %v2775_v55  ;;  %v2770_v17 = vunpack.i.h.bf16 %v2768_v36  ;;  %v2769_v13 = vunpack.i.l.bf16 %v2768_v36 }
 0x199   : > { %v1534_v9 = vpack.c.bf16 %v1518_v30, %v1517_v28 }
 0x19a   : > { %v1515_v50 = vsel %vm1486_vm10, %v1482_v14, %v2769_v13  ;;  %v1516_v58 = vsel %vm1486_vm10, %v1483_v12, %v2770_v17 }
 0x19b   : > { %v1533_v61 = vpack.c.bf16 %v1516_v58, %v1515_v50 }
 0x19d   : > { %2076 = vmatprep.mubr.msk.bf16.mxu1 %vm1555_vm11, %v1533_v61 }
 0x19e   : > { %2077 = vmatmul.mubr.msk.bf16.gmra.mrb[12].mxu1 %vm1555_vm11, %v1534_v9 }
 0x1d4   : > { %v2050_v38 = vpop.f32.mrb[0].mxu0 }
 0x1d5   : > { %v1642_v44 = vpop.f32.mrb[1].mxu0  ;;  %v1809_v31 = vmul.f32 %v2050_v38, %v2050_v38 }
 0x1d6   : > { %v2051_v33 = vpop.f32.mrb[2].mxu0  ;;  %v1807_v63 = vmul.f32 %v1642_v44, %v1642_v44 }
 0x1d7   : > { %v1645_v5 = vpop.f32.mrb[3].mxu0  ;;  %v1810_v49 = vmul.f32 %v2051_v33, %v2051_v33 }
 0x1d8   : > { %v1769_v15 = vadd.f32 %v1645_v5, %v1642_v44  ;;  %v1808_v42 = vmul.f32 %v1645_v5, %v1645_v5 }
 0x1da   : > { %v1770_v20 = vadd.f32 %v2050_v38, %v1769_v15  ;;  %v1839_v0 = vadd.f32 %v1808_v42, %v1807_v63 }
 0x1dc   : > { %v1840_v27 = vadd.f32 %v1839_v0, %v1809_v31  ;;  %v1771_v51 = vadd.f32 %v2051_v33, %v1770_v20 }
 0x1de   : > { %v1841_v52 = vadd.f32 %v1840_v27, %v1810_v49 }
 0x1e8   : > { %v2054_v7 = vpop.f32.mrb[4].mxu0 }
 0x1e9   : > { %v1658_v62 = vpop.f32.mrb[5].mxu0  ;;  %v1813_v3 = vmul.f32 %v2054_v7, %v2054_v7 }
 0x1ea   : > { %v1772_v37 = vadd.f32 %v1771_v51, %v1658_v62  ;;  %v1811_v48 = vmul.f32 %v1658_v62, %v1658_v62  ;;  %v2055_v18 = vpop.f32.mrb[6].mxu0 }
 0x1eb   : > { %v1661_v24 = vpop.f32.mrb[7].mxu0  ;;  %v1814_v54 = vmul.f32 %v2055_v18, %v2055_v18 }
 0x1ec   : > { %v1842_v1 = vadd.f32 %v1841_v52, %v1811_v48  ;;  %v1773_v4 = vadd.f32 %v1772_v37, %v1661_v24  ;;  %v1812_v45 = vmul.f32 %v1661_v24, %v1661_v24 }
 0x1ee   : > { %v1774_v46 = vadd.f32 %v2054_v7, %v1773_v4  ;;  %v1843_v11 = vadd.f32 %v1842_v1, %v1812_v45 }
 0x1f0   : > { %v1844_v25 = vadd.f32 %v1843_v11, %v1813_v3  ;;  %v1775_v23 = vadd.f32 %v2055_v18, %v1774_v46 }
 0x1f2   : > { %v1845_v40 = vadd.f32 %v1844_v25, %v1814_v54 }
 0x1fc   : > { %v2058_v41 = vpop.f32.mrb[8].mxu0 }
 0x1fd   : > { %v1674_v22 = vpop.f32.mrb[9].mxu0  ;;  %v1817_v43 = vmul.f32 %v2058_v41, %v2058_v41 }
 0x1fe   : > { %v1776_v57 = vadd.f32 %v1775_v23, %v1674_v22  ;;  %v1815_v2 = vmul.f32 %v1674_v22, %v1674_v22  ;;  %v2059_v53 = vpop.f32.mrb[10].mxu0 }
 0x1ff   : > { %v1677_v8 = vpop.f32.mrb[11].mxu0  ;;  %v1818_v10 = vmul.f32 %v2059_v53, %v2059_v53 }
 0x200   : > { %v1846_v34 = vadd.f32 %v1845_v40, %v1815_v2  ;;  %v1777_v39 = vadd.f32 %v1776_v57, %v1677_v8  ;;  %v1816_v60 = vmul.f32 %v1677_v8, %v1677_v8 }
 0x202   : > { %v1778_v35 = vadd.f32 %v2058_v41, %v1777_v39  ;;  %v1847_v21 = vadd.f32 %v1846_v34, %v1816_v60 }
 0x204   : > { %v1848_v47 = vadd.f32 %v1847_v21, %v1817_v43  ;;  %v1779_v32 = vadd.f32 %v2059_v53, %v1778_v35 }
 0x206   : > { %v1849_v56 = vadd.f32 %v1848_v47, %v1818_v10 }
 0x211   : > { %v2062_v16 = vpop.f32.mrb[12].mxu0 }
 0x212   : > { %v1690_v55 = vpop.f32.mrb[13].mxu0  ;;  %v1821_v30 = vmul.f32 %v2062_v16, %v2062_v16 }
 0x213   : > { %v1780_v19 = vadd.f32 %v1779_v32, %v1690_v55  ;;  %v1819_v26 = vmul.f32 %v1690_v55, %v1690_v55  ;;  %v2063_v59 = vpop.f32.mrb[14].mxu0 }
 0x214   : > { %v1693_v29 = vpop.f32.mrb[15].mxu0  ;;  %v1822_v14 = vmul.f32 %v2063_v59, %v2063_v59 }
 0x215   : > { %v1850_v6 = vadd.f32 %v1849_v56, %v1819_v26  ;;  %v1781_v36 = vadd.f32 %v1780_v19, %v1693_v29  ;;  %v1820_v28 = vmul.f32 %v1693_v29, %v1693_v29 }
 0x217   : > { %v1782_v17 = vadd.f32 %v2062_v16, %v1781_v36  ;;  %v1851_v13 = vadd.f32 %v1850_v6, %v1820_v28 }
 0x219   : > { %v1852_v12 = vadd.f32 %v1851_v13, %v1821_v30  ;;  %v1783_v9 = vadd.f32 %v2063_v59, %v1782_v17 }
 0x21b   : > { %v1853_v50 = vadd.f32 %v1852_v12, %v1822_v14 }
 0x229   : > { %v2066_v58 = vpop.f32.mrb[0].mxu1 }
 0x22a   : > { %v1706_v61 = vpop.f32.mrb[1].mxu1  ;;  %v1825_v31 = vmul.f32 %v2066_v58, %v2066_v58 }
 0x22b   : > { %v1784_v38 = vadd.f32 %v1783_v9, %v1706_v61  ;;  %v1823_v44 = vmul.f32 %v1706_v61, %v1706_v61  ;;  %v2067_v33 = vpop.f32.mrb[2].mxu1 }
 0x22c   : > { %v1709_v5 = vpop.f32.mrb[3].mxu1  ;;  %v1826_v49 = vmul.f32 %v2067_v33, %v2067_v33 }
 0x22d   : > { %v1854_v63 = vadd.f32 %v1853_v50, %v1823_v44  ;;  %v1785_v15 = vadd.f32 %v1784_v38, %v1709_v5  ;;  %v1824_v42 = vmul.f32 %v1709_v5, %v1709_v5 }
 0x22f   : > { %v1786_v20 = vadd.f32 %v2066_v58, %v1785_v15  ;;  %v1855_v0 = vadd.f32 %v1854_v63, %v1824_v42 }
 0x231   : > { %v1856_v27 = vadd.f32 %v1855_v0, %v1825_v31  ;;  %v1787_v51 = vadd.f32 %v2067_v33, %v1786_v20 }
 0x233   : > { %v1857_v52 = vadd.f32 %v1856_v27, %v1826_v49 }
 0x241   : > { %v2070_v7 = vpop.f32.mrb[4].mxu1 }
 0x242   : > { %v1722_v62 = vpop.f32.mrb[5].mxu1  ;;  %v1829_v3 = vmul.f32 %v2070_v7, %v2070_v7 }
 0x243   : > { %v1788_v37 = vadd.f32 %v1787_v51, %v1722_v62  ;;  %v1827_v48 = vmul.f32 %v1722_v62, %v1722_v62  ;;  %v2071_v18 = vpop.f32.mrb[6].mxu1 }
 0x244   : > { %v1725_v24 = vpop.f32.mrb[7].mxu1  ;;  %v1830_v54 = vmul.f32 %v2071_v18, %v2071_v18 }
 0x245   : > { %v1858_v1 = vadd.f32 %v1857_v52, %v1827_v48  ;;  %v1789_v4 = vadd.f32 %v1788_v37, %v1725_v24  ;;  %v1828_v45 = vmul.f32 %v1725_v24, %v1725_v24 }
 0x247   : > { %v1790_v46 = vadd.f32 %v2070_v7, %v1789_v4  ;;  %v1859_v11 = vadd.f32 %v1858_v1, %v1828_v45 }
 0x249   : > { %v1860_v25 = vadd.f32 %v1859_v11, %v1829_v3  ;;  %v1791_v23 = vadd.f32 %v2071_v18, %v1790_v46 }
 0x24b   : > { %v1861_v40 = vadd.f32 %v1860_v25, %v1830_v54 }
 0x259   : > { %v2074_v41 = vpop.f32.mrb[8].mxu1 }
 0x25a   : > { %v1738_v22 = vpop.f32.mrb[9].mxu1  ;;  %v1833_v43 = vmul.f32 %v2074_v41, %v2074_v41 }
 0x25b   : > { %v1792_v57 = vadd.f32 %v1791_v23, %v1738_v22  ;;  %v1831_v2 = vmul.f32 %v1738_v22, %v1738_v22  ;;  %v2075_v53 = vpop.f32.mrb[10].mxu1 }
 0x25c   : > { %v1741_v8 = vpop.f32.mrb[11].mxu1  ;;  %v1834_v10 = vmul.f32 %v2075_v53, %v2075_v53 }
 0x25d   : > { %v1862_v34 = vadd.f32 %v1861_v40, %v1831_v2  ;;  %v1793_v39 = vadd.f32 %v1792_v57, %v1741_v8  ;;  %v1832_v60 = vmul.f32 %v1741_v8, %v1741_v8 }
 0x25f   : > { %v1794_v35 = vadd.f32 %v2074_v41, %v1793_v39  ;;  %v1863_v21 = vadd.f32 %v1862_v34, %v1832_v60 }
 0x261   : > { %v1864_v47 = vadd.f32 %v1863_v21, %v1833_v43  ;;  %v1795_v32 = vadd.f32 %v2075_v53, %v1794_v35 }
 0x263   : > { %v1865_v56 = vadd.f32 %v1864_v47, %v1834_v10 }
 0x271   : > { %v2078_v16 = vpop.f32.mrb[12].mxu1 }
 0x272   : > { %v1754_v55 = vpop.f32.mrb[13].mxu1  ;;  %v1837_v30 = vmul.f32 %v2078_v16, %v2078_v16 }
 0x273   : > { %v1796_v19 = vadd.f32 %v1795_v32, %v1754_v55  ;;  %v1835_v26 = vmul.f32 %v1754_v55, %v1754_v55  ;;  %v2079_v59 = vpop.f32.mrb[14].mxu1 }
 0x274   : > { %v1757_v29 = vpop.f32.mrb[15].mxu1  ;;  %v1838_v14 = vmul.f32 %v2079_v59, %v2079_v59 }
 0x275   : > { %v1866_v6 = vadd.f32 %v1865_v56, %v1835_v26  ;;  %v1797_v36 = vadd.f32 %v1796_v19, %v1757_v29  ;;  %v1836_v28 = vmul.f32 %v1757_v29, %v1757_v29 }
 0x277   : > { %v1798_v17 = vadd.f32 %v2078_v16, %v1797_v36  ;;  %v1867_v13 = vadd.f32 %v1866_v6, %v1836_v28 }
 0x279   : > { %v1799_v12 = vadd.f32 %v2079_v59, %v1798_v17  ;;  %v1868_v9 = vadd.f32 %v1867_v13, %v1837_v30 }
 0x27b   : > { %v1800_v50 = vrot.slane %v1799_v12, 4  ;;  %v1869_v58 = vadd.f32 %v1868_v9, %v1838_v14 }
 0x27d   : > { %v1801_v61 = vadd.f32 %v1800_v50, %v1799_v12  ;;  %v1870_v38 = vrot.slane %v1869_v58, 4 }
 0x27f   : > { %v1802_v44 = vrot.slane %v1801_v61, 2  ;;  %v1871_v33 = vadd.f32 %v1870_v38, %v1869_v58 }
 0x281   : > { %v1803_v5 = vadd.f32 %v1802_v44, %v1801_v61  ;;  %v1872_v63 = vrot.slane %v1871_v33, 2 }
 0x283   : > { %v1804_v15 = vrot.slane %v1803_v5, 1  ;;  %v1873_v42 = vadd.f32 %v1872_v63, %v1871_v33 }
 0x285   : > { %v1805_v31 = vadd.f32 %v1804_v15, %v1803_v5  ;;  %v1874_v20 = vrot.slane %v1873_v42, 1 }
 0x287   : > { %1806 = vst [vmem:[%s136_s24] sm:$0x1] %v1805_v31  ;;  %v1875_v0 = vadd.f32 %v1874_v20, %v1873_v42 }
 0x289   : > { %1876 = vst [vmem:[%s136_s24 + $0x1] sm:$0x1] %v1875_v0 }
 0x28a   : > { %2792 = shalt.err (!%p2789_p3)
}
 0x28b   : > { %s2793_s5 = scalar_lea.hbm %s4182_s28, 32  ;;  %s2797_s8 = scalar_lea.hbm %s4226_s2, 64 }
 0x28c   : > { %p2794_p4 = scmp.ne.s32.totalorder %s4182_s28, %s2793_s5  ;;  %p2798_p9 = scmp.lt.u32.totalorder %s4182_s28, %s4226_s2 }
 0x28d   : > { %p2799_p10 = scmp.lt.u32.totalorder %s2797_s8, %s2793_s5  ;;  %p2801_p12 = scmp.lt.u32.totalorder %s2793_s5, %s4182_s28 }
 0x28e   : > { %p2795_p7 = pnand %p2794_p4, %p2905_p5 }
 0x28f   : > { %p2800_p11 = por %p2799_p10, %p2798_p9 }
 0x290   : > { %p2796_p8 = pneg %p2795_p7 }
 0x291   : > { %p2802_p13 = por %p2801_p12, %p2800_p11 }
 0x293   : > { %p2803_p0 = pnand %p2802_p13, %p2796_p8 }
 0x295   : > { %2806 = shalt.err (!%p2803_p0)
}
 0x296   : > { %2089 = dma.vmem_to_hbm [thread:$0]  (%p2905_p5), %s4184_s25, 32, %s4182_s28, %s1878_s29  }
 0x297 PF: > { %p2095_p1 = scmp.ge.s32.totalorder %s2841_s12, 2  ;;  %s1903_s17 = sand.u32 1, %s2829_s9  }
 0x298   : > { %s1904_s21 = scalar_lea.sflag [#allocation3], %s1903_s17 }
 0x299   : > { %p2092_p2 = pnand %p2095_p1, %p2909_p6 }
 0x29b   : > { %2824 = dma.done.wait (!%p2092_p2), %s1904_s21, 32  }
 0x29c   : > { %2826 = vsyncadd (!%p2092_p2), %s1904_s21, 4294967264  ;;  %p12_p3 = scmp.ge.s32.totalorder %s2892_s15, 4   ;;  %s4388_s9 = smov %s2833_s10 }
 0x29d   : > { %s4389_s10 = smov %s2837_s11  ;;  %s4390_s11 = smov %s2903_s18 }
 0x29e   : > { %s4391_s12 = smov %s2892_s15  ;;  %14 = sbr.rel (!%p12_p3) target bundleno = 3 (0x3), region = 63 }
 0x2a5   :  { %1909 = vsyncpa [#allocation3], 1 }
 0x2a6   :  { %1911 = vsyncpa [#allocation3 + $0x1], 1 }

</bundles_post_ra>
